<compile_context>
chip_gen: v7x
topology: tpu7x:2x2x1
jax: 0.10.0
libtpu: 0.0.40
codegen_flags: <defaults>
</compile_context>

<pallas_src>
import jax
import jax.numpy as jnp
from jax import lax
from jax.experimental import pallas as pl
from jax.experimental.pallas import tpu as pltpu


# ----------------------------------------------------------------------------
# Fused kernel: one grid step per batch element.
# ----------------------------------------------------------------------------
def _make_kernel(H, W, Cin, Cmid, Cout_pad, halo):
    P = H * W

    def kernel(x_ref, s1_ref, b1_ref, w1_ref, s2_ref, b2_ref, w2_ref,
               o_ref, pad_ref):
        # x_ref  : (1, P, Cin)          f32
        # s1/b1  : (1, Cin)             f32   folded BN1 scale / shift
        # w1_ref : (Cin, Cmid)          bf16  1x1 conv weight
        # s2/b2  : (1, Cmid)            f32   folded BN2 scale / shift
        # w2_ref : (9, Cmid, Cout_pad)  bf16  3x3 conv weight, tap-major, padded
        # o_ref  : (1, P, Cout_pad)     f32   lane-dense output block
        # pad_ref: (P + 2*halo, Cmid)   f32   row-halo-padded bottleneck act.
        x = x_ref[0]                                             # (P, Cin)

        # ---- BN1 (folded) + ReLU: f32 element-wise on the VPU ---------------
        t = jnp.maximum(x * s1_ref[...] + b1_ref[...], 0.0)

        # ---- 1x1 conv == channel matmul on the MXU (bf16 in, f32 acc) -------
        t2 = jnp.dot(t.astype(jnp.bfloat16), w1_ref[...],
                     preferred_element_type=jnp.float32)         # (P, Cmid)

        # ---- BN2 (folded) + ReLU ---------------------------------------------
        a = jnp.maximum(t2 * s2_ref[...] + b2_ref[...], 0.0)     # (P, Cmid)

        # ---- row-halo-padded copy: zero ONLY the halos, one aligned store ----
        # (f32 scratch keeps the 9 sublane-misaligned slice loads on the plain
        #  32-bit path; the bf16 cast happens per-tap and fuses into the matmul
        #  input, so there is no extra full-width cast pass over VMEM.)
        pad_ref[:halo, :] = jnp.zeros((halo, Cmid), jnp.float32)
        pad_ref[halo + P:, :] = jnp.zeros((halo, Cmid), jnp.float32)
        pad_ref[halo:halo + P, :] = a          # halo is 8-aligned -> full vst

        # column-edge validity masks (row edges are handled by the zero halos)
        col = lax.broadcasted_iota(jnp.int32, (P, 1), 0) % W
        col_ok = {-1: col >= 1, 0: None, 1: col < (W - 1)}

        # ---- 3x3 conv: 9 accumulated (P, Cmid) x (Cmid, Cout_pad) matmuls ----
        acc = jnp.zeros((P, Cout_pad), jnp.float32)
        for dy in (-1, 0, 1):
            for dx in (-1, 0, 1):
                k = (dy + 1) * 3 + (dx + 1)
                off = halo + dy * W + dx
                tap = pad_ref[off:off + P, :]        # shifted view, (P, Cmid)
                mask = col_ok[dx]
                if mask is not None:
                    tap = jnp.where(mask, tap, 0.0)  # value select, no stores
                acc = acc + jnp.dot(tap.astype(jnp.bfloat16), w2_ref[k],
                                    preferred_element_type=jnp.float32)

        o_ref[0] = acc                    # single unmasked lane-dense store

    return kernel


def _vmem_limit_bytes():
    # Per-generation budget (review: never request all of v7x's 64 MiB).
    try:
        cap = int(pltpu.get_tpu_info().vmem_capacity_bytes)
        return min(64 * 1024 * 1024, cap * 3 // 4)
    except Exception:
        return None          # fall back to the compiler default


# ----------------------------------------------------------------------------
# Wrapper
# ----------------------------------------------------------------------------
def dense_layer_forward(x_nchw, params):
    N, Cin, H, W = x_nchw.shape
    P = H * W
    Cmid = params["w1"].shape[1]
    Cout = params["w2_torch"].shape[0]
    Cout_pad = params["w2"].shape[-1]
    halo = -(-(W + 1) // 8) * 8            # >= W+1, 8-aligned main store

    # NCHW -> flattened NHWC (channels on the lane dim).  In a full DenseNet
    # block the activations would stay in this layout end-to-end; these
    # transposes only exist because the module boundary is NCHW.
    x = jnp.transpose(x_nchw, (0, 2, 3, 1)).reshape(N, P, Cin).astype(jnp.float32)

    s1 = params["scale1"].reshape(1, Cin)
    b1 = params["shift1"].reshape(1, Cin)
    s2 = params["scale2"].reshape(1, Cmid)
    b2 = params["shift2"].reshape(1, Cmid)

    flops = 2 * N * P * (Cin * Cmid + 9 * Cmid * Cout_pad)
    bytes_accessed = (4 * N * P * (Cin + Cout_pad)
                      + 2 * (Cin * Cmid + 9 * Cmid * Cout_pad)
                      + 4 * 2 * (Cin + Cmid))

    out = pl.pallas_call(
        _make_kernel(H, W, Cin, Cmid, Cout_pad, halo),
        out_shape=jax.ShapeDtypeStruct((N, P, Cout_pad), jnp.float32),
        grid=(N,),
        in_specs=[
            pl.BlockSpec((1, P, Cin), lambda n: (n, 0, 0)),
            pl.BlockSpec((1, Cin), lambda n: (0, 0)),
            pl.BlockSpec((1, Cin), lambda n: (0, 0)),
            pl.BlockSpec((Cin, Cmid), lambda n: (0, 0)),
            pl.BlockSpec((1, Cmid), lambda n: (0, 0)),
            pl.BlockSpec((1, Cmid), lambda n: (0, 0)),
            pl.BlockSpec((9, Cmid, Cout_pad), lambda n: (0, 0, 0)),
        ],
        out_specs=pl.BlockSpec((1, P, Cout_pad), lambda n: (n, 0, 0)),
        scratch_shapes=[pltpu.VMEM((P + 2 * halo, Cmid), jnp.float32)],
        compiler_params=pltpu.CompilerParams(
            dimension_semantics=("parallel",),
            vmem_limit_bytes=_vmem_limit_bytes()),
        cost_estimate=pl.CostEstimate(flops=flops, transcendentals=0,
                                      bytes_accessed=bytes_accessed),
    )(x, s1, b1, params["w1"], s2, b2, params["w2"])

    out = out[:, :, :Cout].reshape(N, H, W, Cout)      # drop padded channels
    return jnp.transpose(out, (0, 3, 1, 2))            # back to NCHW


# ----------------------------------------------------------------------------
# Deterministic parameter construction (shapes from _DenseLayer.__init__)
# ----------------------------------------------------------------------------
def init_params(key, num_input_features, growth_rate, bn_size):
    Cin = num_input_features
    Cmid = bn_size * growth_rate
    Cout = growth_rate
    Cout_pad = ((Cout + 127) // 128) * 128
    eps = 1e-5
    ks = jax.random.split(key, 10)

    gamma1 = jax.random.uniform(ks[0], (Cin,), jnp.float32, 0.5, 1.5)
    beta1 = 0.1 * jax.random.normal(ks[1], (Cin,), jnp.float32)
    mean1 = 0.1 * jax.random.normal(ks[2], (Cin,), jnp.float32)
    var1 = jax.random.uniform(ks[3], (Cin,), jnp.float32, 0.5, 1.5)

    gamma2 = jax.random.uniform(ks[4], (Cmid,), jnp.float32, 0.5, 1.5)
    beta2 = 0.1 * jax.random.normal(ks[5], (Cmid,), jnp.float32)
    mean2 = 0.1 * jax.random.normal(ks[6], (Cmid,), jnp.float32)
    var2 = jax.random.uniform(ks[7], (Cmid,), jnp.float32, 0.5, 1.5)

    w1_torch = 0.1 * jax.random.normal(ks[8], (Cmid, Cin, 1, 1), jnp.float32)    # OIHW
    w2_torch = 0.05 * jax.random.normal(ks[9], (Cout, Cmid, 3, 3), jnp.float32)  # OIHW

    scale1 = gamma1 / jnp.sqrt(var1 + eps)
    shift1 = beta1 - mean1 * scale1
    scale2 = gamma2 / jnp.sqrt(var2 + eps)
    shift2 = beta2 - mean2 * scale2

    # kernel-friendly weight layouts: bf16, tap-major, Cout zero-padded to a
    # multiple of 128 so the output block is lane-dense (unmasked stores).
    w1 = jnp.transpose(w1_torch[:, :, 0, 0], (1, 0)).astype(jnp.bfloat16)        # (Cin, Cmid)
    w2_taps = jnp.transpose(w2_torch, (2, 3, 1, 0)).reshape(9, Cmid, Cout)       # (kh*kw, ci, o)
    w2 = jnp.pad(w2_taps, ((0, 0), (0, 0), (0, Cout_pad - Cout))).astype(jnp.bfloat16)

    return {
        "scale1": scale1, "shift1": shift1,
        "scale2": scale2, "shift2": shift2,
        "w1": w1, "w2": w2,
        # original PyTorch layouts kept (f32) for the reference check
        "w1_torch": w1_torch, "w2_torch": w2_torch,
    }


# ----------------------------------------------------------------------------
# Pure-JAX reference (f32 lax.conv) for verification
# ----------------------------------------------------------------------------
def ref_forward(x_nchw, p):
    def bn(x, scale, shift):
        return x * scale[None, :, None, None] + shift[None, :, None, None]

    t = jax.nn.relu(bn(x_nchw, p["scale1"], p["shift1"]))
    b = lax.conv_general_dilated(t, p["w1_torch"], (1, 1), "VALID",
                                 dimension_numbers=("NCHW", "OIHW", "NCHW"))
    t2 = jax.nn.relu(bn(b, p["scale2"], p["shift2"]))
    out = lax.conv_general_dilated(t2, p["w2_torch"], (1, 1), ((1, 1), (1, 1)),
                                   dimension_numbers=("NCHW", "OIHW", "NCHW"))
    return out
    # TODO(synk): training-mode BatchNorm (batch statistics) and active dropout
    # are not implemented; this reproduces eval-mode semantics only.


if __name__ == "__main__":
    num_input_features, growth_rate, bn_size = 16, 8, 4   # Cmid = 32, Cout = 8
    N, H, W = 2, 16, 16

    key = jax.random.PRNGKey(0)
    kx, kp = jax.random.split(key)
    x = jax.random.normal(kx, (N, num_input_features, H, W), jnp.float32)  # NCHW
    params = init_params(kp, num_input_features, growth_rate, bn_size)

    fwd = jax.jit(dense_layer_forward)
    out = jax.block_until_ready(fwd(x, params))

    ref = ref_forward(x, params)
    assert out.shape == (N, growth_rate, H, W)
    # bf16 matmul operands (f32 accumulation) vs. a pure-f32 reference.
    assert bool(jnp.allclose(out, ref, atol=3e-2, rtol=3e-2)), "mismatch vs reference"

    print("KERNEL_OK")
</pallas_src>

<mosaic_0001>
module attributes {stable_mosaic.version = 11 : i64} {
  func.func @kernel(%arg0: i32, %arg1: memref<1x256x16xf32, #tpu.memory_space<vmem>>, %arg2: memref<1x16xf32, #tpu.memory_space<vmem>>, %arg3: memref<1x16xf32, #tpu.memory_space<vmem>>, %arg4: memref<16x32xbf16, #tpu.memory_space<vmem>>, %arg5: memref<1x32xf32, #tpu.memory_space<vmem>>, %arg6: memref<1x32xf32, #tpu.memory_space<vmem>>, %arg7: memref<9x32x128xbf16, #tpu.memory_space<vmem>>, %arg8: memref<1x256x128xf32, #tpu.memory_space<vmem>>, %arg9: memref<304x32xf32, #tpu.memory_space<vmem>>) attributes {dimension_semantics = [#tpu.dimension_semantics<parallel>], iteration_bounds = array<i64: 2>, scalar_prefetch = 0 : i64, scratch_operands = 1 : i64, tpu.core_type = #tpu.core_type<tc>, window_params = [{transform_indices = @transform_0, window_bounds = array<i64: 1, 256, 16>}, {pipeline_mode = #tpu.pipeline_mode<synchronous>, transform_indices = @transform_1, window_bounds = array<i64: 1, 16>}, {pipeline_mode = #tpu.pipeline_mode<synchronous>, transform_indices = @transform_2, window_bounds = array<i64: 1, 16>}, {pipeline_mode = #tpu.pipeline_mode<synchronous>, transform_indices = @transform_3, window_bounds = array<i64: 16, 32>}, {pipeline_mode = #tpu.pipeline_mode<synchronous>, transform_indices = @transform_4, window_bounds = array<i64: 1, 32>}, {pipeline_mode = #tpu.pipeline_mode<synchronous>, transform_indices = @transform_5, window_bounds = array<i64: 1, 32>}, {pipeline_mode = #tpu.pipeline_mode<synchronous>, transform_indices = @transform_6, window_bounds = array<i64: 9, 32, 128>}, {transform_indices = @transform_7, window_bounds = array<i64: 1, 256, 128>}]} {
    %c0 = arith.constant 0 : index
    %c0_0 = arith.constant 0 : index
    %c0_1 = arith.constant 0 : index
    %0 = vector.load %arg1[%c0, %c0_0, %c0_1] : memref<1x256x16xf32, #tpu.memory_space<vmem>>, vector<1x256x16xf32>
    %1 = vector.shape_cast %0 : vector<1x256x16xf32> to vector<256x16xf32>
    %c0_2 = arith.constant 0 : index
    %c0_3 = arith.constant 0 : index
    %2 = vector.load %arg2[%c0_2, %c0_3] : memref<1x16xf32, #tpu.memory_space<vmem>>, vector<1x16xf32>
    %3 = vector.broadcast %2 : vector<1x16xf32> to vector<256x16xf32>
    %4 = arith.mulf %1, %3 : vector<256x16xf32>
    %c0_4 = arith.constant 0 : index
    %c0_5 = arith.constant 0 : index
    %5 = vector.load %arg3[%c0_4, %c0_5] : memref<1x16xf32, #tpu.memory_space<vmem>>, vector<1x16xf32>
    %6 = vector.broadcast %5 : vector<1x16xf32> to vector<256x16xf32>
    %7 = arith.addf %4, %6 : vector<256x16xf32>
    %cst = arith.constant 0.000000e+00 : f32
    %8 = vector.broadcast %cst : f32 to vector<256x16xf32>
    %9 = arith.maximumf %7, %8 : vector<256x16xf32>
    %10 = arith.truncf %9 : vector<256x16xf32> to vector<256x16xbf16>
    %c0_6 = arith.constant 0 : index
    %c0_7 = arith.constant 0 : index
    %11 = vector.load %arg4[%c0_6, %c0_7] : memref<16x32xbf16, #tpu.memory_space<vmem>>, vector<16x32xbf16>
    %cst_8 = arith.constant dense<0.000000e+00> : vector<256x32xf32>
    %12 = tpu.matmul %10, %11, %cst_8 {dimension_numbers = #tpu.dot_dimension_numbers<[1], [0], [0], [1], [0, 0, 1, 1], [], []>} : vector<256x16xbf16>, vector<16x32xbf16>, vector<256x32xf32> -> vector<256x32xf32>
    %c0_9 = arith.constant 0 : index
    %c0_10 = arith.constant 0 : index
    %13 = vector.load %arg5[%c0_9, %c0_10] : memref<1x32xf32, #tpu.memory_space<vmem>>, vector<1x32xf32>
    %14 = vector.broadcast %13 : vector<1x32xf32> to vector<256x32xf32>
    %15 = arith.mulf %12, %14 : vector<256x32xf32>
    %c0_11 = arith.constant 0 : index
    %c0_12 = arith.constant 0 : index
    %16 = vector.load %arg6[%c0_11, %c0_12] : memref<1x32xf32, #tpu.memory_space<vmem>>, vector<1x32xf32>
    %17 = vector.broadcast %16 : vector<1x32xf32> to vector<256x32xf32>
    %18 = arith.addf %15, %17 : vector<256x32xf32>
    %cst_13 = arith.constant 0.000000e+00 : f32
    %19 = vector.broadcast %cst_13 : f32 to vector<256x32xf32>
    %20 = arith.maximumf %18, %19 : vector<256x32xf32>
    %cst_14 = arith.constant 0.000000e+00 : f32
    %21 = vector.broadcast %cst_14 : f32 to vector<24x32xf32>
    %c0_15 = arith.constant 0 : index
    %c0_16 = arith.constant 0 : index
    %22 = vector.load %arg9[%c0_15, %c0_16] : memref<304x32xf32, #tpu.memory_space<vmem>>, vector<24x32xf32>
    tpu.vector_store %arg9[%c0_15, %c0_16], %21 {strides = array<i32>} : memref<304x32xf32, #tpu.memory_space<vmem>>, vector<24x32xf32>,
    %cst_17 = arith.constant 0.000000e+00 : f32
    %23 = vector.broadcast %cst_17 : f32 to vector<24x32xf32>
    %c280 = arith.constant 280 : index
    %c0_18 = arith.constant 0 : index
    %24 = vector.load %arg9[%c280, %c0_18] : memref<304x32xf32, #tpu.memory_space<vmem>>, vector<24x32xf32>
    tpu.vector_store %arg9[%c280, %c0_18], %23 {strides = array<i32>} : memref<304x32xf32, #tpu.memory_space<vmem>>, vector<24x32xf32>,
    %c24 = arith.constant 24 : index
    %c0_19 = arith.constant 0 : index
    %25 = vector.load %arg9[%c24, %c0_19] : memref<304x32xf32, #tpu.memory_space<vmem>>, vector<256x32xf32>
    tpu.vector_store %arg9[%c24, %c0_19], %20 {strides = array<i32>} : memref<304x32xf32, #tpu.memory_space<vmem>>, vector<256x32xf32>,
    %26 = tpu.iota {dimensions = array<i32: 0>} : vector<256x1xi32>
    %c16_i32 = arith.constant 16 : i32
    %c0_i32 = arith.constant 0 : i32
    %27 = arith.cmpi eq, %c16_i32, %c0_i32 : i32
    %c1_i32 = arith.constant 1 : i32
    %28 = arith.select %27, %c1_i32, %c16_i32 : i32
    %29 = vector.broadcast %28 : i32 to vector<256x1xi32>
    %30 = arith.remsi %26, %29 : vector<256x1xi32>
    %c0_i32_20 = arith.constant 0 : i32
    %31 = vector.broadcast %c0_i32_20 : i32 to vector<256x1xi32>
    %32 = arith.cmpi ne, %30, %31 : vector<256x1xi32>
    %c0_i32_21 = arith.constant 0 : i32
    %33 = vector.broadcast %c0_i32_21 : i32 to vector<256x1xi32>
    %34 = arith.cmpi slt, %30, %33 : vector<256x1xi32>
    %c0_i32_22 = arith.constant 0 : i32
    %35 = arith.cmpi slt, %28, %c0_i32_22 : i32
    %36 = vector.broadcast %35 : i1 to vector<256x1xi1>
    %37 = vector.broadcast %36 : vector<256x1xi1> to vector<256x1xi1>
    %38 = arith.xori %34, %37 : vector<256x1xi1>
    %39 = arith.andi %38, %32 : vector<256x1xi1>
    %40 = vector.broadcast %28 : i32 to vector<256x1xi32>
    %41 = arith.addi %30, %40 : vector<256x1xi32>
    %42 = arith.select %39, %41, %30 : vector<256x1xi1>, vector<256x1xi32>
    %c1_i32_23 = arith.constant 1 : i32
    %43 = vector.broadcast %c1_i32_23 : i32 to vector<256x1xi32>
    %44 = arith.cmpi sge, %42, %43 : vector<256x1xi32>
    %c15_i32 = arith.constant 15 : i32
    %45 = vector.broadcast %c15_i32 : i32 to vector<256x1xi32>
    %46 = arith.cmpi slt, %42, %45 : vector<256x1xi32>
    %cst_24 = arith.constant 0.000000e+00 : f32
    %47 = vector.broadcast %cst_24 : f32 to vector<256x128xf32>
    %c7 = arith.constant 7 : index
    %c0_25 = arith.constant 0 : index
    %48 = vector.load %arg9[%c7, %c0_25] : memref<304x32xf32, #tpu.memory_space<vmem>>, vector<256x32xf32>
    %cst_26 = arith.constant 0.000000e+00 : f32
    %49 = vector.shape_cast %44 : vector<256x1xi1> to vector<256x1xi1>
    %50 = vector.broadcast %49 : vector<256x1xi1> to vector<256x32xi1>
    %51 = vector.broadcast %cst_26 : f32 to vector<256x32xf32>
    %52 = arith.select %50, %48, %51 : vector<256x32xi1>, vector<256x32xf32>
    %53 = arith.truncf %52 : vector<256x32xf32> to vector<256x32xbf16>
    %c0_27 = arith.constant 0 : index
    %c0_28 = arith.constant 0 : index
    %c0_29 = arith.constant 0 : index
    %54 = vector.load %arg7[%c0_27, %c0_28, %c0_29] : memref<9x32x128xbf16, #tpu.memory_space<vmem>>, vector<1x32x128xbf16>
    %55 = vector.shape_cast %54 : vector<1x32x128xbf16> to vector<32x128xbf16>
    %cst_30 = arith.constant dense<0.000000e+00> : vector<256x128xf32>
    %56 = tpu.matmul %53, %55, %cst_30 {dimension_numbers = #tpu.dot_dimension_numbers<[1], [0], [0], [1], [0, 0, 1, 1], [], []>} : vector<256x32xbf16>, vector<32x128xbf16>, vector<256x128xf32> -> vector<256x128xf32>
    %57 = arith.addf %47, %56 : vector<256x128xf32>
    %c8 = arith.constant 8 : index
    %c0_31 = arith.constant 0 : index
    %58 = vector.load %arg9[%c8, %c0_31] : memref<304x32xf32, #tpu.memory_space<vmem>>, vector<256x32xf32>
    %59 = arith.truncf %58 : vector<256x32xf32> to vector<256x32xbf16>
    %c1 = arith.constant 1 : index
    %c0_32 = arith.constant 0 : index
    %c0_33 = arith.constant 0 : index
    %60 = vector.load %arg7[%c1, %c0_32, %c0_33] : memref<9x32x128xbf16, #tpu.memory_space<vmem>>, vector<1x32x128xbf16>
    %61 = vector.shape_cast %60 : vector<1x32x128xbf16> to vector<32x128xbf16>
    %cst_34 = arith.constant dense<0.000000e+00> : vector<256x128xf32>
    %62 = tpu.matmul %59, %61, %cst_34 {dimension_numbers = #tpu.dot_dimension_numbers<[1], [0], [0], [1], [0, 0, 1, 1], [], []>} : vector<256x32xbf16>, vector<32x128xbf16>, vector<256x128xf32> -> vector<256x128xf32>
    %63 = arith.addf %57, %62 : vector<256x128xf32>
    %c9 = arith.constant 9 : index
    %c0_35 = arith.constant 0 : index
    %64 = vector.load %arg9[%c9, %c0_35] : memref<304x32xf32, #tpu.memory_space<vmem>>, vector<256x32xf32>
    %cst_36 = arith.constant 0.000000e+00 : f32
    %65 = vector.shape_cast %46 : vector<256x1xi1> to vector<256x1xi1>
    %66 = vector.broadcast %65 : vector<256x1xi1> to vector<256x32xi1>
    %67 = vector.broadcast %cst_36 : f32 to vector<256x32xf32>
    %68 = arith.select %66, %64, %67 : vector<256x32xi1>, vector<256x32xf32>
    %69 = arith.truncf %68 : vector<256x32xf32> to vector<256x32xbf16>
    %c2 = arith.constant 2 : index
    %c0_37 = arith.constant 0 : index
    %c0_38 = arith.constant 0 : index
    %70 = vector.load %arg7[%c2, %c0_37, %c0_38] : memref<9x32x128xbf16, #tpu.memory_space<vmem>>, vector<1x32x128xbf16>
    %71 = vector.shape_cast %70 : vector<1x32x128xbf16> to vector<32x128xbf16>
    %cst_39 = arith.constant dense<0.000000e+00> : vector<256x128xf32>
    %72 = tpu.matmul %69, %71, %cst_39 {dimension_numbers = #tpu.dot_dimension_numbers<[1], [0], [0], [1], [0, 0, 1, 1], [], []>} : vector<256x32xbf16>, vector<32x128xbf16>, vector<256x128xf32> -> vector<256x128xf32>
    %73 = arith.addf %63, %72 : vector<256x128xf32>
    %c23 = arith.constant 23 : index
    %c0_40 = arith.constant 0 : index
    %74 = vector.load %arg9[%c23, %c0_40] : memref<304x32xf32, #tpu.memory_space<vmem>>, vector<256x32xf32>
    %cst_41 = arith.constant 0.000000e+00 : f32
    %75 = vector.shape_cast %44 : vector<256x1xi1> to vector<256x1xi1>
    %76 = vector.broadcast %75 : vector<256x1xi1> to vector<256x32xi1>
    %77 = vector.broadcast %cst_41 : f32 to vector<256x32xf32>
    %78 = arith.select %76, %74, %77 : vector<256x32xi1>, vector<256x32xf32>
    %79 = arith.truncf %78 : vector<256x32xf32> to vector<256x32xbf16>
    %c3 = arith.constant 3 : index
    %c0_42 = arith.constant 0 : index
    %c0_43 = arith.constant 0 : index
    %80 = vector.load %arg7[%c3, %c0_42, %c0_43] : memref<9x32x128xbf16, #tpu.memory_space<vmem>>, vector<1x32x128xbf16>
    %81 = vector.shape_cast %80 : vector<1x32x128xbf16> to vector<32x128xbf16>
    %cst_44 = arith.constant dense<0.000000e+00> : vector<256x128xf32>
    %82 = tpu.matmul %79, %81, %cst_44 {dimension_numbers = #tpu.dot_dimension_numbers<[1], [0], [0], [1], [0, 0, 1, 1], [], []>} : vector<256x32xbf16>, vector<32x128xbf16>, vector<256x128xf32> -> vector<256x128xf32>
    %83 = arith.addf %73, %82 : vector<256x128xf32>
    %c24_45 = arith.constant 24 : index
    %c0_46 = arith.constant 0 : index
    %84 = vector.load %arg9[%c24_45, %c0_46] : memref<304x32xf32, #tpu.memory_space<vmem>>, vector<256x32xf32>
    %85 = arith.truncf %84 : vector<256x32xf32> to vector<256x32xbf16>
    %c4 = arith.constant 4 : index
    %c0_47 = arith.constant 0 : index
    %c0_48 = arith.constant 0 : index
    %86 = vector.load %arg7[%c4, %c0_47, %c0_48] : memref<9x32x128xbf16, #tpu.memory_space<vmem>>, vector<1x32x128xbf16>
    %87 = vector.shape_cast %86 : vector<1x32x128xbf16> to vector<32x128xbf16>
    %cst_49 = arith.constant dense<0.000000e+00> : vector<256x128xf32>
    %88 = tpu.matmul %85, %87, %cst_49 {dimension_numbers = #tpu.dot_dimension_numbers<[1], [0], [0], [1], [0, 0, 1, 1], [], []>} : vector<256x32xbf16>, vector<32x128xbf16>, vector<256x128xf32> -> vector<256x128xf32>
    %89 = arith.addf %83, %88 : vector<256x128xf32>
    %c25 = arith.constant 25 : index
    %c0_50 = arith.constant 0 : index
    %90 = vector.load %arg9[%c25, %c0_50] : memref<304x32xf32, #tpu.memory_space<vmem>>, vector<256x32xf32>
    %cst_51 = arith.constant 0.000000e+00 : f32
    %91 = vector.shape_cast %46 : vector<256x1xi1> to vector<256x1xi1>
    %92 = vector.broadcast %91 : vector<256x1xi1> to vector<256x32xi1>
    %93 = vector.broadcast %cst_51 : f32 to vector<256x32xf32>
    %94 = arith.select %92, %90, %93 : vector<256x32xi1>, vector<256x32xf32>
    %95 = arith.truncf %94 : vector<256x32xf32> to vector<256x32xbf16>
    %c5 = arith.constant 5 : index
    %c0_52 = arith.constant 0 : index
    %c0_53 = arith.constant 0 : index
    %96 = vector.load %arg7[%c5, %c0_52, %c0_53] : memref<9x32x128xbf16, #tpu.memory_space<vmem>>, vector<1x32x128xbf16>
    %97 = vector.shape_cast %96 : vector<1x32x128xbf16> to vector<32x128xbf16>
    %cst_54 = arith.constant dense<0.000000e+00> : vector<256x128xf32>
    %98 = tpu.matmul %95, %97, %cst_54 {dimension_numbers = #tpu.dot_dimension_numbers<[1], [0], [0], [1], [0, 0, 1, 1], [], []>} : vector<256x32xbf16>, vector<32x128xbf16>, vector<256x128xf32> -> vector<256x128xf32>
    %99 = arith.addf %89, %98 : vector<256x128xf32>
    %c39 = arith.constant 39 : index
    %c0_55 = arith.constant 0 : index
    %100 = vector.load %arg9[%c39, %c0_55] : memref<304x32xf32, #tpu.memory_space<vmem>>, vector<256x32xf32>
    %cst_56 = arith.constant 0.000000e+00 : f32
    %101 = vector.shape_cast %44 : vector<256x1xi1> to vector<256x1xi1>
    %102 = vector.broadcast %101 : vector<256x1xi1> to vector<256x32xi1>
    %103 = vector.broadcast %cst_56 : f32 to vector<256x32xf32>
    %104 = arith.select %102, %100, %103 : vector<256x32xi1>, vector<256x32xf32>
    %105 = arith.truncf %104 : vector<256x32xf32> to vector<256x32xbf16>
    %c6 = arith.constant 6 : index
    %c0_57 = arith.constant 0 : index
    %c0_58 = arith.constant 0 : index
    %106 = vector.load %arg7[%c6, %c0_57, %c0_58] : memref<9x32x128xbf16, #tpu.memory_space<vmem>>, vector<1x32x128xbf16>
    %107 = vector.shape_cast %106 : vector<1x32x128xbf16> to vector<32x128xbf16>
    %cst_59 = arith.constant dense<0.000000e+00> : vector<256x128xf32>
    %108 = tpu.matmul %105, %107, %cst_59 {dimension_numbers = #tpu.dot_dimension_numbers<[1], [0], [0], [1], [0, 0, 1, 1], [], []>} : vector<256x32xbf16>, vector<32x128xbf16>, vector<256x128xf32> -> vector<256x128xf32>
    %109 = arith.addf %99, %108 : vector<256x128xf32>
    %c40 = arith.constant 40 : index
    %c0_60 = arith.constant 0 : index
    %110 = vector.load %arg9[%c40, %c0_60] : memref<304x32xf32, #tpu.memory_space<vmem>>, vector<256x32xf32>
    %111 = arith.truncf %110 : vector<256x32xf32> to vector<256x32xbf16>
    %c7_61 = arith.constant 7 : index
    %c0_62 = arith.constant 0 : index
    %c0_63 = arith.constant 0 : index
    %112 = vector.load %arg7[%c7_61, %c0_62, %c0_63] : memref<9x32x128xbf16, #tpu.memory_space<vmem>>, vector<1x32x128xbf16>
    %113 = vector.shape_cast %112 : vector<1x32x128xbf16> to vector<32x128xbf16>
    %cst_64 = arith.constant dense<0.000000e+00> : vector<256x128xf32>
    %114 = tpu.matmul %111, %113, %cst_64 {dimension_numbers = #tpu.dot_dimension_numbers<[1], [0], [0], [1], [0, 0, 1, 1], [], []>} : vector<256x32xbf16>, vector<32x128xbf16>, vector<256x128xf32> -> vector<256x128xf32>
    %115 = arith.addf %109, %114 : vector<256x128xf32>
    %c41 = arith.constant 41 : index
    %c0_65 = arith.constant 0 : index
    %116 = vector.load %arg9[%c41, %c0_65] : memref<304x32xf32, #tpu.memory_space<vmem>>, vector<256x32xf32>
    %cst_66 = arith.constant 0.000000e+00 : f32
    %117 = vector.shape_cast %46 : vector<256x1xi1> to vector<256x1xi1>
    %118 = vector.broadcast %117 : vector<256x1xi1> to vector<256x32xi1>
    %119 = vector.broadcast %cst_66 : f32 to vector<256x32xf32>
    %120 = arith.select %118, %116, %119 : vector<256x32xi1>, vector<256x32xf32>
    %121 = arith.truncf %120 : vector<256x32xf32> to vector<256x32xbf16>
    %c8_67 = arith.constant 8 : index
    %c0_68 = arith.constant 0 : index
    %c0_69 = arith.constant 0 : index
    %122 = vector.load %arg7[%c8_67, %c0_68, %c0_69] : memref<9x32x128xbf16, #tpu.memory_space<vmem>>, vector<1x32x128xbf16>
    %123 = vector.shape_cast %122 : vector<1x32x128xbf16> to vector<32x128xbf16>
    %cst_70 = arith.constant dense<0.000000e+00> : vector<256x128xf32>
    %124 = tpu.matmul %121, %123, %cst_70 {dimension_numbers = #tpu.dot_dimension_numbers<[1], [0], [0], [1], [0, 0, 1, 1], [], []>} : vector<256x32xbf16>, vector<32x128xbf16>, vector<256x128xf32> -> vector<256x128xf32>
    %125 = arith.addf %115, %124 : vector<256x128xf32>
    %c0_71 = arith.constant 0 : index
    %c0_72 = arith.constant 0 : index
    %c0_73 = arith.constant 0 : index
    %126 = vector.load %arg8[%c0_71, %c0_72, %c0_73] : memref<1x256x128xf32, #tpu.memory_space<vmem>>, vector<1x256x128xf32>
    %127 = vector.shape_cast %126 : vector<1x256x128xf32> to vector<256x128xf32>
    %128 = vector.shape_cast %125 : vector<256x128xf32> to vector<1x256x128xf32>
    tpu.vector_store %arg8[%c0_71, %c0_72, %c0_73], %128 {strides = array<i32>} : memref<1x256x128xf32, #tpu.memory_space<vmem>>, vector<1x256x128xf32>,
    return
  }
  func.func @transform_0(%arg0: i32) -> (i32, i32, i32) {
    %c0_i32 = arith.constant 0 : i32
    %c0_i32_0 = arith.constant 0 : i32
    %c0_i32_1 = arith.constant 0 : i32
    return %arg0, %c0_i32, %c0_i32_0 : i32, i32, i32
  }
  func.func @transform_1(%arg0: i32) -> (i32, i32) {
    %c0_i32 = arith.constant 0 : i32
    %c0_i32_0 = arith.constant 0 : i32
    %c0_i32_1 = arith.constant 0 : i32
    return %c0_i32, %c0_i32_0 : i32, i32
  }
  func.func @transform_2(%arg0: i32) -> (i32, i32) {
    %c0_i32 = arith.constant 0 : i32
    %c0_i32_0 = arith.constant 0 : i32
    %c0_i32_1 = arith.constant 0 : i32
    return %c0_i32, %c0_i32_0 : i32, i32
  }
  func.func @transform_3(%arg0: i32) -> (i32, i32) {
    %c0_i32 = arith.constant 0 : i32
    %c0_i32_0 = arith.constant 0 : i32
    %c0_i32_1 = arith.constant 0 : i32
    return %c0_i32, %c0_i32_0 : i32, i32
  }
  func.func @transform_4(%arg0: i32) -> (i32, i32) {
    %c0_i32 = arith.constant 0 : i32
    %c0_i32_0 = arith.constant 0 : i32
    %c0_i32_1 = arith.constant 0 : i32
    return %c0_i32, %c0_i32_0 : i32, i32
  }
  func.func @transform_5(%arg0: i32) -> (i32, i32) {
    %c0_i32 = arith.constant 0 : i32
    %c0_i32_0 = arith.constant 0 : i32
    %c0_i32_1 = arith.constant 0 : i32
    return %c0_i32, %c0_i32_0 : i32, i32
  }
  func.func @transform_6(%arg0: i32) -> (i32, i32, i32) {
    %c0_i32 = arith.constant 0 : i32
    %c0_i32_0 = arith.constant 0 : i32
    %c0_i32_1 = arith.constant 0 : i32
    %c0_i32_2 = arith.constant 0 : i32
    return %c0_i32, %c0_i32_0, %c0_i32_1 : i32, i32, i32
  }
  func.func @transform_7(%arg0: i32) -> (i32, i32, i32) {
    %c0_i32 = arith.constant 0 : i32
    %c0_i32_0 = arith.constant 0 : i32
    %c0_i32_1 = arith.constant 0 : i32
    return %arg0, %c0_i32, %c0_i32_0 : i32, i32, i32
  }
}

</mosaic_0001>

<bundles_post_ra>
// kernel: dense_layer_forward.1
= control target key start
LH: loop header
LB: loop body
LE: loop exit
PB: predicated region body
PF: predicated region fallthrough
CT: control target
= control target key end

     0   :  { %s5481_s24 = smov 0   ;;  %s6854_s0 = inlined_call_operand.vmem [shape: f32[2,256,16], index: 0, kind: input, shape index: {}]   ;;  %s6855_s1 = inlined_call_operand.vmem [shape: f32[1,16], index: 1, kind: input, shape index: {}]   ;;  %s6856_s2 = inlined_call_operand.vmem [shape: f32[1,16], index: 2, kind: input, shape index: {}]   ;;  %s6857_s3 = inlined_call_operand.vmem [shape: bf16[16,32], index: 3, kind: input, shape index: {}]   ;;  %s6858_s4 = inlined_call_operand.vmem [shape: f32[1,32], index: 4, kind: input, shape index: {}]   ;;  %s6859_s5 = inlined_call_operand.vmem [shape: f32[1,32], index: 5, kind: input, shape index: {}]   ;;  %s6860_s6 = inlined_call_operand.vmem [shape: bf16[9,32,128], index: 6, kind: input, shape index: {}]   ;;  %s6861_s7 = inlined_call_operand.vmem [shape: f32[2,256,128], index: 7, kind: output, shape index: {}]  }
   0x1 LB: > { %s4382_s25 = sadd.s32 4294967295, %s5438_s24   ;;  %p4386_p0 = scmp.ge.s32.totalorder %s5438_s24, 1  ;;  %s5438_s24 = sphi %s5481_s24, %s17_s24  }
   0x2   : > { %p237_p1 = scmp.lt.s32.totalorder %s5438_s24, 3 }
   0x4   : > { %p238_p2 = pnand %p4386_p0, %p237_p1 }
   0x6   : > { %241 = sbr.rel (%p238_p2) target bundleno = 801 (0x321), region = 48 }
   0xd   : > { %v5412_v0 = vld [vmem:[%s6857_s3] sm:$0xff]   ;;  %p269_p3 = scmp.lt.s32.totalorder %s4382_s25, 1  ;;  %vm446_vm0 = vcmask 130048   ;;  %vm6931_vm1 = vcmask 261120  }
   0xe   : > { %4789 = vmatprep.subr.bf16.mxu0 %v5412_v0  ;;  %v5497_v1 = vld [vmem:[%s6855_s1] ss:$0 sm:$0xff] }
   0xf   : > { %s7373_s25 = smov (!%p269_p3, %s4382_s25), 1  ;;  %4790 = vmatpush3.bf16.msra.mxu0 %v5412_v0  ;;  %v5503_v2 = vld [vmem:[%s6856_s2] ss:$0 sm:$0xff] }
  0x10   : > { %s4608_s30 = sshll.u32 %s7373_s25, 8 }
  0x11   : > { %s5510_s12 = scalar_lea.vmem %s6854_s0, %s4608_s30  ;;  %s6800_s15 = scalar_lea.vmem %s6861_s7, %s4608_s30 }
  0x12   : > { %v280_v3 = vld [vmem:[%s5510_s12] sm:$0xff]  ;;  %v281_v4 = vld [vmem:[%s5510_s12 + $0x8] sm:$0xff]  ;;  %v282_v5 = vld [vmem:[%s5510_s12 + $0x10] sm:$0xff] }
  0x13   : > { %v319_v6 = vmul.f32 %v5497_v1, %v280_v3  ;;  %v320_v7 = vmul.f32 %v5497_v1, %v281_v4  ;;  %v283_v8 = vld [vmem:[%s5510_s12 + $0x18] sm:$0xff]  ;;  %v321_v9 = vmul.f32 %v5497_v1, %v282_v5  ;;  %v284_v10 = vld [vmem:[%s5510_s12 + $0x20] sm:$0xff]  ;;  %v285_v11 = vld [vmem:[%s5510_s12 + $0x28] sm:$0xff] }
  0x14   : > { %v322_v12 = vmul.f32 %v5497_v1, %v283_v8  ;;  %v323_v13 = vmul.f32 %v5497_v1, %v284_v10  ;;  %v324_v14 = vmul.f32 %v5497_v1, %v285_v11  ;;  %v286_v15 = vld [vmem:[%s5510_s12 + $0x30] sm:$0xff]  ;;  %v287_v16 = vld [vmem:[%s5510_s12 + $0x38] sm:$0xff]  ;;  %v288_v25 = vld [vmem:[%s5510_s12 + $0x40] sm:$0xff] }
  0x15   : > { %v358_v17 = vadd.f32 %v5503_v2, %v319_v6  ;;  %v359_v18 = vadd.f32 %v5503_v2, %v320_v7  ;;  %v360_v19 = vadd.f32 %v5503_v2, %v321_v9  ;;  %v325_v20 = vmul.f32 %v5497_v1, %v286_v15  ;;  %v289_v26 = vld [vmem:[%s5510_s12 + $0x48] sm:$0xff]  ;;  %v290_v38 = vld [vmem:[%s5510_s12 + $0x50] sm:$0xff]  ;;  %v291_v39 = vld [vmem:[%s5510_s12 + $0x58] sm:$0xff] }
  0x16   : > { %v361_v21 = vadd.f32 %v5503_v2, %v322_v12  ;;  %v362_v22 = vadd.f32 %v5503_v2, %v323_v13  ;;  %v363_v23 = vadd.f32 %v5503_v2, %v324_v14  ;;  %v326_v24 = vmul.f32 %v5497_v1, %v287_v16  ;;  %v292_v42 = vld [vmem:[%s5510_s12 + $0x60] sm:$0xff]  ;;  %v293_v43 = vld [vmem:[%s5510_s12 + $0x68] sm:$0xff]  ;;  %v294_v54 = vld [vmem:[%s5510_s12 + $0x70] sm:$0xff] }
  0x17   : > { %v390_v27 = vmax.f32 %v358_v17, 0.0  ;;  %v391_v28 = vmax.f32 %v359_v18, 0.0  ;;  %v392_v29 = vmax.f32 %v360_v19, 0.0  ;;  %v364_v30 = vadd.f32 %v5503_v2, %v325_v20  ;;  %v295_v55 = vld [vmem:[%s5510_s12 + $0x78] sm:$0xff]  ;;  %v296_v59 = vld [vmem:[%s5510_s12 + $0x80] sm:$0xff]  ;;  %v297_v63 = vld [vmem:[%s5510_s12 + $0x88] sm:$0xff] }
  0x18   : > { %v393_v31 = vmax.f32 %v361_v21, 0.0  ;;  %v394_v32 = vmax.f32 %v362_v22, 0.0  ;;  %v395_v33 = vmax.f32 %v363_v23, 0.0  ;;  %v365_v34 = vadd.f32 %v5503_v2, %v326_v24  ;;  %v298_v16 = vld [vmem:[%s5510_s12 + $0x90] sm:$0xff]  ;;  %v299_v17 = vld [vmem:[%s5510_s12 + $0x98] sm:$0xff]  ;;  %v300_v18 = vld [vmem:[%s5510_s12 + $0xa0] sm:$0xff] }
  0x19   : > { %v422_v35 = vpack.c.bf16 %v391_v28, %v390_v27  ;;  %v327_v36 = vmul.f32 %v5497_v1, %v288_v25  ;;  %v328_v37 = vmul.f32 %v5497_v1, %v289_v26  ;;  %v396_v46 = vmax.f32 %v364_v30, 0.0  ;;  %v301_v19 = vld [vmem:[%s5510_s12 + $0xa8] sm:$0xff] }
  0x1a   : > { %v423_v40 = vpack.c.bf16 %v393_v31, %v392_v29  ;;  %v424_v41 = vpack.c.bf16 %v395_v33, %v394_v32  ;;  %v397_v47 = vmax.f32 %v365_v34, 0.0  ;;  %v329_v48 = vmul.f32 %v5497_v1, %v290_v38  ;;  %v302_v34 = vld [vmem:[%s5510_s12 + $0xb0] sm:$0xff] }
  0x1b   : > { %4791 = vmatprep.mubr.msk.bf16.mxu0 %vm446_vm0, %v422_v35  ;;  %v366_v44 = vadd.f32 %v5503_v2, %v327_v36  ;;  %v367_v45 = vadd.f32 %v5503_v2, %v328_v37  ;;  %v330_v49 = vmul.f32 %v5497_v1, %v291_v39  ;;  %v331_v52 = vmul.f32 %v5497_v1, %v292_v42  ;;  %v303_v35 = vld [vmem:[%s5510_s12 + $0xb8] sm:$0xff]  ;;  %v304_v36 = vld [vmem:[%s5510_s12 + $0xc0] sm:$0xff]  ;;  %v305_v37 = vld [vmem:[%s5510_s12 + $0xc8] sm:$0xff] }
  0x1c   : > { %4792 = vmatmul.mubr.msk.bf16.vlgmr.msra.gmra.mrb[0].mxu0 %vm446_vm0, %v423_v40  ;;  %v332_v53 = vmul.f32 %v5497_v1, %v293_v43  ;;  %v425_v56 = vpack.c.bf16 %v397_v47, %v396_v46  ;;  %v368_v57 = vadd.f32 %v5503_v2, %v329_v48  ;;  %v333_v4 = vmul.f32 %v5497_v1, %v294_v54  ;;  %v308_v54 = vld [vmem:[%s5510_s12 + $0xe0] sm:$0xff] }
  0x1d   : > { %4795 = vmatprep.mubr.msk.bf16.mxu0 %vm446_vm0, %v424_v41  ;;  %v398_v50 = vmax.f32 %v366_v44, 0.0  ;;  %v399_v51 = vmax.f32 %v367_v45, 0.0  ;;  %v369_v58 = vadd.f32 %v5503_v2, %v330_v49  ;;  %v370_v61 = vadd.f32 %v5503_v2, %v331_v52  ;;  %v306_v52 = vld [vmem:[%s5510_s12 + $0xd0] sm:$0xff] }
  0x1e   : > { %v371_v62 = vadd.f32 %v5503_v2, %v332_v53  ;;  %v400_v0 = vmax.f32 %v368_v57, 0.0  ;;  %v334_v5 = vmul.f32 %v5497_v1, %v295_v55  ;;  %v335_v8 = vmul.f32 %v5497_v1, %v296_v59  ;;  %v307_v53 = vld [vmem:[%s5510_s12 + $0xd8] sm:$0xff]  ;;  %v309_v55 = vld [vmem:[%s5510_s12 + $0xe8] sm:$0xff] }
  0x1f   : > { %v426_v60 = vpack.c.bf16 %v399_v51, %v398_v50  ;;  %v401_v3 = vmax.f32 %v369_v58, 0.0  ;;  %v402_v6 = vmax.f32 %v370_v61, 0.0  ;;  %v336_v9 = vmul.f32 %v5497_v1, %v297_v63 }
  0x20   : > { %v403_v7 = vmax.f32 %v371_v62, 0.0  ;;  %v372_v11 = vadd.f32 %v5503_v2, %v333_v4  ;;  %v373_v12 = vadd.f32 %v5503_v2, %v334_v5  ;;  %v374_v14 = vadd.f32 %v5503_v2, %v335_v8  ;;  %v310_v8 = vld [vmem:[%s5510_s12 + $0xf0] sm:$0xff] }
  0x21   : > { %v427_v10 = vpack.c.bf16 %v401_v3, %v400_v0  ;;  %v375_v15 = vadd.f32 %v5503_v2, %v336_v9  ;;  %v337_v22 = vmul.f32 %v5497_v1, %v298_v16  ;;  %v338_v23 = vmul.f32 %v5497_v1, %v299_v17  ;;  %v311_v9 = vld [vmem:[%s5510_s12 + $0xf8] sm:$0xff] }
  0x22   : > { %v428_v13 = vpack.c.bf16 %v403_v7, %v402_v6  ;;  %v404_v20 = vmax.f32 %v372_v11, 0.0  ;;  %v405_v21 = vmax.f32 %v373_v12, 0.0  ;;  %v406_v24 = vmax.f32 %v374_v14, 0.0 }
  0x23   : > { %v407_v25 = vmax.f32 %v375_v15, 0.0  ;;  %v339_v26 = vmul.f32 %v5497_v1, %v300_v18  ;;  %v340_v27 = vmul.f32 %v5497_v1, %v301_v19  ;;  %v376_v29 = vadd.f32 %v5503_v2, %v337_v22 }
  0x24   : > { %4796 = vmatmul.mubr.msk.bf16.gmra.mrb[4].mxu0 %vm446_vm0, %v425_v56  ;;  %v429_v28 = vpack.c.bf16 %v405_v21, %v404_v20  ;;  %v377_v30 = vadd.f32 %v5503_v2, %v338_v23  ;;  %v341_v40 = vmul.f32 %v5497_v1, %v302_v34  ;;  %v342_v41 = vmul.f32 %v5497_v1, %v303_v35  ;;  %v5414_v23 = vld [vmem:[%s6860_s6 + $0x40] sm:$0xff]  }
  0x25   : > { %4799 = vmatprep.mubr.msk.bf16.mxu0 %vm446_vm0, %v426_v60  ;;  %v430_v31 = vpack.c.bf16 %v407_v25, %v406_v24  ;;  %v378_v32 = vadd.f32 %v5503_v2, %v339_v26  ;;  %v379_v33 = vadd.f32 %v5503_v2, %v340_v27  ;;  %v408_v38 = vmax.f32 %v376_v29, 0.0  ;;  %4967 = vmatprep.subr.bf16.mxu1 %v5414_v23  ;;  %v5415_v24 = vld [vmem:[%s6860_s6 + $0x18] sm:$0xff]   ;;  %v5416_v25 = vld [vmem:[%s6860_s6 + $0x48] sm:$0xff]   ;;  %v5646_v29 = vld [vmem:[%s6860_s6 + $0x50] sm:$0xff]  }
  0x26   : > { %v409_v39 = vmax.f32 %v377_v30, 0.0  ;;  %v343_v44 = vmul.f32 %v5497_v1, %v304_v36  ;;  %v344_v45 = vmul.f32 %v5497_v1, %v305_v37  ;;  %v380_v47 = vadd.f32 %v5503_v2, %v341_v40  ;;  %4968 = vmatpush3.bf16.msra.mxu1 %v5414_v23  ;;  %v5652_v30 = vld [vmem:[%s6860_s6] sm:$0xff]   ;;  %v5418_v23 = vld [vmem:[%s6860_s6 + $0x58] sm:$0xff]  }
  0x27   : > { %v410_v42 = vmax.f32 %v378_v32, 0.0  ;;  %v411_v43 = vmax.f32 %v379_v33, 0.0  ;;  %v381_v48 = vadd.f32 %v5503_v2, %v342_v41  ;;  %v345_v58 = vmul.f32 %v5497_v1, %v306_v52  ;;  %4969 = vmatprep.subr.bf16.mxu1 %v5416_v25  ;;  %v5663_v33 = vld [vmem:[%s6859_s5] ss:$0 sm:$0xff] }
  0x28   : > { %v431_v46 = vpack.c.bf16 %v409_v39, %v408_v38  ;;  %v382_v50 = vadd.f32 %v5503_v2, %v343_v44  ;;  %v383_v51 = vadd.f32 %v5503_v2, %v344_v45  ;;  %v412_v56 = vmax.f32 %v380_v47, 0.0 }
  0x29   : > { %v432_v49 = vpack.c.bf16 %v411_v43, %v410_v42  ;;  %v413_v57 = vmax.f32 %v381_v48, 0.0  ;;  %v346_v59 = vmul.f32 %v5497_v1, %v307_v53  ;;  %v347_v62 = vmul.f32 %v5497_v1, %v308_v54 }
  0x2a   : > { %v414_v60 = vmax.f32 %v382_v50, 0.0  ;;  %v415_v61 = vmax.f32 %v383_v51, 0.0  ;;  %v348_v63 = vmul.f32 %v5497_v1, %v309_v55  ;;  %v384_v3 = vadd.f32 %v5503_v2, %v345_v58  ;;  %4970 = vmatpush3.bf16.msra.mxu1 %v5416_v25 }
  0x2b   : > { %v433_v0 = vpack.c.bf16 %v413_v57, %v412_v56  ;;  %v385_v4 = vadd.f32 %v5503_v2, %v346_v59  ;;  %v386_v6 = vadd.f32 %v5503_v2, %v347_v62  ;;  %v349_v12 = vmul.f32 %v5497_v1, %v310_v8  ;;  %5003 = vmatprep.subr.bf16.mxu1 %v5646_v29 }
  0x2c   : > { %4800 = vmatmul.mubr.msk.bf16.gmra.mrb[8].mxu0 %vm446_vm0, %v427_v10  ;;  %v434_v5 = vpack.c.bf16 %v415_v61, %v414_v60  ;;  %v387_v7 = vadd.f32 %v5503_v2, %v348_v63  ;;  %v416_v10 = vmax.f32 %v384_v3, 0.0  ;;  %v805_v41 = vlaneseq }
  0x2d   : > { %4803 = vmatprep.mubr.msk.bf16.mxu0 %vm446_vm0, %v428_v13  ;;  %v417_v11 = vmax.f32 %v385_v4, 0.0  ;;  %v350_v13 = vmul.f32 %v5497_v1, %v311_v9  ;;  %v418_v14 = vmax.f32 %v386_v6, 0.0  ;;  %v388_v17 = vadd.f32 %v5503_v2, %v349_v12 }
  0x2e   : > { %v419_v15 = vmax.f32 %v387_v7, 0.0  ;;  %v5440_v1 = vmov 0.0   ;;  %v6991_v25 = vmov 0 }
  0x2f   : > { %v435_v16 = vpack.c.bf16 %v417_v11, %v416_v10  ;;  %v389_v18 = vadd.f32 %v5503_v2, %v350_v13  ;;  %v420_v20 = vmax.f32 %v388_v17, 0.0  ;;  %768 = vst.msk [vmem:[#allocation2 + $0x8] sm:$0xff] %vm6931_vm1, %v5440_v1  ;;  %769 = vst.msk [vmem:[#allocation2 + $0x10] sm:$0xff] %vm6931_vm1, %v5440_v1  ;;  %v5413_v2 = vld [vmem:[%s6860_s6 + $0x10] sm:$0xff]   ;;  %v6988_v13 = vmov 0 }
  0x30   : > { %v436_v19 = vpack.c.bf16 %v419_v15, %v418_v14  ;;  %767 = vst.msk [vmem:[#allocation2] sm:$0xff] %vm6931_vm1, %v5440_v1  ;;  %770 = vst.msk [vmem:[#allocation2 + $0x118] sm:$0xff] %vm6931_vm1, %v5440_v1  ;;  %4823 = vmatprep.subr.bf16.mxu0 %v5413_v2 }
  0x31   : > { %v421_v21 = vmax.f32 %v389_v18, 0.0  ;;  %771 = vst.msk [vmem:[#allocation2 + $0x120] sm:$0xff] %vm6931_vm1, %v5440_v1  ;;  %772 = vst.msk [vmem:[#allocation2 + $0x128] sm:$0xff] %vm6931_vm1, %v5440_v1  ;;  %4824 = vmatpush3.bf16.msra.mxu0 %v5413_v2 }
  0x32   : > { %4825 = vmatprep.subr.bf16.mxu0 %v5415_v24 }
  0x33   : > { %v437_v22 = vpack.c.bf16 %v421_v21, %v420_v20 }
  0x34   : > { %4804 = vmatmul.mubr.msk.bf16.gmra.mrb[12].mxu0 %vm446_vm0, %v429_v28 }
  0x35   : > { %4807 = vmatprep.mubr.msk.bf16.mxu0 %vm446_vm0, %v430_v31  ;;  %4826 = vmatpush3.bf16.msra.mxu0 %v5415_v24  ;;  %v5658_v31 = vld [vmem:[%s6858_s4] ss:$0 sm:$0xff] }
  0x36   : > { %v1434_v26 = vld [vmem:[#allocation2 + $0x8] sm:$0xff]  ;;  %v1435_v27 = vld [vmem:[#allocation2 + $0x10] sm:$0xff]  ;;  %4859 = vmatprep.subr.bf16.mxu0 %v5652_v30 }
  0x37   : > { %v1466_v28 = vpack.c.bf16 %v1435_v27, %v1434_v26 }
  0x3c   : > { %4808 = vmatmul.mubr.msk.bf16.gmra.mrb[16].mxu0 %vm446_vm0, %v431_v46 }
  0x3d   : > { %4811 = vmatprep.mubr.msk.bf16.mxu0 %vm446_vm0, %v432_v49  ;;  %v5674_v49 = vshrl.u32 %v805_v41, 7  ;;  %v6994_v41 = vmov 0 }
  0x3f   : > { %v809_v56 = vadd.s32 24, %v5674_v49  ;;  %v808_v60 = vadd.s32 16, %v5674_v49  ;;  %v842_v63 = vand.u32 15, %v5674_v49  ;;  %v813_v20 = vadd.s32 56, %v5674_v49 }
  0x40   : > { %v5708_v24 = vadd.s32 32, %v5674_v49 }
  0x41   : > { %v863_v7 = vand.u32 15, %v809_v56  ;;  %v856_v9 = vand.u32 15, %v808_v60  ;;  %vm5693_vm2 = vcmp.ge.s32.totalorder %v842_v63, 1 }
  0x42   : > { %v6989_v13 = vsel %vm5693_vm2, 4294967295, %v6988_v13  ;;  %v870_v60 = vand.u32 15, %v5708_v24  ;;  %v819_v24 = vadd.s32 104, %v5674_v49 }
  0x43   : > { %6990 = vst [vmem:[#allocation3_spill] sm:$0xff] %v6989_v13  ;;  %vm5710_vm3 = vcmp.lt.s32.totalorder %v863_v7, 15  ;;  %vm5732_vm4 = vcmp.ge.s32.totalorder %v856_v9, 1 }
  0x44   : > { %4812 = vmatmul.mubr.msk.bf16.gmra.mrb[20].mxu0 %vm446_vm0, %v433_v0  ;;  %v811_v0 = vadd.s32 40, %v5674_v49  ;;  %v6992_v25 = vsel %vm5710_vm3, 4294967295, %v6991_v25  ;;  %v6995_v41 = vsel %vm5732_vm4, 4294967295, %v6994_v41  ;;  %vm5815_vm7 = vcmp.ge.s32.totalorder %v870_v60, 1 }
  0x45   : > { %4815 = vmatprep.mubr.msk.bf16.mxu0 %vm446_vm0, %v434_v5  ;;  %6993 = vst [vmem:[#allocation4_spill] sm:$0xff] %v6992_v25  ;;  %6996 = vst [vmem:[#allocation5_spill] sm:$0xff] %v6995_v41 }
  0x46   : > { %v877_v15 = vand.u32 15, %v811_v0 }
  0x48   : > { %vm5738_vm5 = vcmp.lt.s32.totalorder %v877_v15, 15 }
  0x4c   : > { %4816 = vmatmul.mubr.msk.bf16.gmra.mrb[24].mxu0 %vm446_vm0, %v435_v16 }
  0x4d   : > { %4819 = vmatprep.mubr.msk.bf16.mxu0 %vm446_vm0, %v436_v19 }
  0x54   : > { %4820 = vmatmul.mubr.msk.bf16.gmra.mrb[28].mxu0 %vm446_vm0, %v437_v22 }
  0x55   : > { %4827 = vmatprep.mubr.msk.bf16.mxu0 %vm6931_vm1, %v1466_v28 }
  0xef   : > { %v4793_v32 = vpop.f32.mrb[0].mxu0 }
  0xf0   : > { %v665_v34 = vmul.f32 %v4793_v32, %v5658_v31  ;;  %v529_v35 = vpop.f32.mrb[1].mxu0 }
  0xf1   : > { %v663_v36 = vmul.f32 %v5658_v31, %v529_v35  ;;  %v4794_v37 = vpop.f32.mrb[2].mxu0  ;;  %v5420_v35 = vld [vmem:[%s6860_s6 + $0x8] sm:$0xff]  }
  0xf2   : > { %v704_v38 = vadd.f32 %v5663_v33, %v665_v34  ;;  %v666_v39 = vmul.f32 %v4794_v37, %v5658_v31  ;;  %v532_v40 = vpop.f32.mrb[3].mxu0 }
  0xf3   : > { %v702_v42 = vadd.f32 %v5663_v33, %v663_v36  ;;  %v664_v43 = vmul.f32 %v5658_v31, %v532_v40 }
  0xf4   : > { %v736_v44 = vmax.f32 %v704_v38, 0.0  ;;  %v705_v45 = vadd.f32 %v5663_v33, %v666_v39 }
  0xf5   : > { %v734_v46 = vmax.f32 %v702_v42, 0.0  ;;  %v703_v47 = vadd.f32 %v5663_v33, %v664_v43  ;;  %v6997_v43 = vmov 0 }
  0xf6   : > { %775 = vst.msk [vmem:[#allocation2 + $0x28] sm:$0xff] %vm6931_vm1, %v736_v44  ;;  %v737_v48 = vmax.f32 %v705_v45, 0.0  ;;  %v6998_v43 = vsel %vm5738_vm5, 4294967295, %v6997_v43 }
  0xf7   : > { %773 = vst.msk [vmem:[#allocation2 + $0x18] sm:$0xff] %vm6931_vm1, %v734_v46  ;;  %v735_v50 = vmax.f32 %v703_v47, 0.0  ;;  %v4797_v51 = vpop.f32.mrb[4].mxu0  ;;  %6999 = vst [vmem:[#allocation6_spill] sm:$0xff] %v6998_v43  ;;  %v891_v46 = vand.u32 15, %v813_v20  ;;  %v815_v47 = vadd.s32 72, %v5674_v49 }
  0xf8   : > { %776 = vst.msk [vmem:[#allocation2 + $0x30] sm:$0xff] %vm6931_vm1, %v737_v48  ;;  %v669_v52 = vmul.f32 %v4797_v51, %v5658_v31  ;;  %v545_v53 = vpop.f32.mrb[5].mxu0 }
  0xf9   : > { %774 = vst.msk [vmem:[#allocation2 + $0x20] sm:$0xff] %vm6931_vm1, %v735_v50  ;;  %v667_v54 = vmul.f32 %v5658_v31, %v545_v53  ;;  %v4798_v55 = vpop.f32.mrb[6].mxu0  ;;  %vm5780_vm6 = vcmp.lt.s32.totalorder %v891_v46, 15 }
  0xfa   : > { %v708_v57 = vadd.f32 %v5663_v33, %v669_v52  ;;  %v670_v58 = vmul.f32 %v4798_v55, %v5658_v31  ;;  %v548_v59 = vpop.f32.mrb[7].mxu0 }
  0xfb   : > { %v706_v61 = vadd.f32 %v5663_v33, %v667_v54  ;;  %v668_v62 = vmul.f32 %v5658_v31, %v548_v59  ;;  %v5759_v54 = vld [vmem:[%s6860_s6 + $0x60] sm:$0xff]  }
  0xfc   : > { %v740_v3 = vmax.f32 %v708_v57, 0.0  ;;  %v709_v4 = vadd.f32 %v5663_v33, %v670_v58 }
  0xfd   : > { %v738_v5 = vmax.f32 %v706_v61, 0.0  ;;  %v707_v6 = vadd.f32 %v5663_v33, %v668_v62  ;;  %v1438_v2 = vld [vmem:[#allocation2 + $0x28] sm:$0xff] }
  0xfe   : > { %779 = vst.msk [vmem:[#allocation2 + $0x48] sm:$0xff] %vm6931_vm1, %v740_v3  ;;  %v741_v8 = vmax.f32 %v709_v4, 0.0  ;;  %v5697_v14 = vld [vmem:[#allocation2 + $0x17] sm:$0xff] }
  0xff   : > { %777 = vst.msk [vmem:[#allocation2 + $0x38] sm:$0xff] %vm6931_vm1, %v738_v5  ;;  %v739_v10 = vmax.f32 %v707_v6, 0.0  ;;  %v4801_v11 = vpop.f32.mrb[8].mxu0  ;;  %v1439_v12 = vld [vmem:[#allocation2 + $0x30] sm:$0xff]  ;;  %v1436_v18 = vld [vmem:[#allocation2 + $0x18] sm:$0xff]  ;;  %v2363_v37 = vsel %vm5693_vm2, %v5697_v14, 0.0 }
 0x100   : > { %780 = vst.msk [vmem:[#allocation2 + $0x50] sm:$0xff] %vm6931_vm1, %v741_v8  ;;  %v673_v16 = vmul.f32 %v4801_v11, %v5658_v31  ;;  %v561_v17 = vpop.f32.mrb[9].mxu0  ;;  %v1437_v19 = vld [vmem:[#allocation2 + $0x20] sm:$0xff]  ;;  %v1468_v32 = vpack.c.bf16 %v1439_v12, %v1438_v2  ;;  %v5778_v4 = vld [vmem:[#allocation2 + $0x29] sm:$0xff]  ;;  %v7004_v5 = vmov 0  ;;  %v905_v11 = vand.u32 15, %v815_v47 }
 0x101   : > { %778 = vst.msk [vmem:[#allocation2 + $0x40] sm:$0xff] %vm6931_vm1, %v739_v10  ;;  %v671_v21 = vmul.f32 %v5658_v31, %v561_v17  ;;  %v4802_v22 = vpop.f32.mrb[10].mxu0  ;;  %v1467_v1 = vpack.c.bf16 %v1437_v19, %v1436_v18  ;;  %v5716_v34 = vld [vmem:[#allocation2 + $0x21] sm:$0xff]  ;;  %v5730_v40 = vld [vmem:[#allocation2 + $0x19] sm:$0xff]  ;;  %v7005_v5 = vsel %vm5780_vm6, 4294967295, %v7004_v5 }
 0x102   : > { %v712_v26 = vadd.f32 %v5663_v33, %v673_v16  ;;  %v674_v27 = vmul.f32 %v4802_v22, %v5658_v31  ;;  %v564_v28 = vpop.f32.mrb[11].mxu0  ;;  %v5721_v36 = vld [vmem:[#allocation2 + $0x1f] sm:$0xff]  ;;  %v5736_v42 = vld [vmem:[#allocation2 + $0x27] sm:$0xff]  ;;  %v2028_v51 = vsel %vm5710_vm3, %v5716_v34, 0.0  ;;  %7006 = vst [vmem:[#allocation11_spill] sm:$0xff] %v7005_v5  ;;  %vm5822_vm8 = vcmp.lt.s32.totalorder %v905_v11, 15 }
 0x103   : > { %v710_v38 = vadd.f32 %v5663_v33, %v671_v21  ;;  %v672_v39 = vmul.f32 %v5658_v31, %v564_v28  ;;  %4828 = vmatmul.mubr.msk.bf16.vlgmr.msra.gmra.mrb[32].mxu0 %vm6931_vm1, %v1467_v1  ;;  %4971 = vmatprep.mubr.msk.bf16.mxu1 %vm6931_vm1, %v1467_v1  ;;  %v5753_v52 = vpack.c.bf16 %v5721_v36, %v2363_v37  ;;  %v2365_v56 = vsel %vm5732_vm4, %v5736_v42, 0.0  ;;  %v5792_v12 = vld [vmem:[%s6860_s6 + $0x20] sm:$0xff]  }
 0x104   : > { %v744_v44 = vmax.f32 %v712_v26, 0.0  ;;  %v713_v45 = vadd.f32 %v5663_v33, %v674_v27  ;;  %4831 = vmatprep.mubr.msk.bf16.mxu0 %vm6931_vm1, %v1468_v32  ;;  %4972 = vmatmul.mubr.msk.bf16.vlgmr.msra.gmra.mrb[0].mxu1 %vm6931_vm1, %v1468_v32  ;;  %v5766_v55 = vpack.c.bf16 %v2028_v51, %v5730_v40  ;;  %7007 = vst [vmem:[#allocation12_spill] sm:$0xff] %v5792_v12  ;;  %v817_v21 = vadd.s32 88, %v5674_v49 }
 0x105   : > { %v742_v48 = vmax.f32 %v710_v38, 0.0  ;;  %v711_v50 = vadd.f32 %v5663_v33, %v672_v39  ;;  %5004 = vmatpush3.bf16.msra.mxu1 %v5646_v29  ;;  %4860 = vmatpush3.bf16.msra.mxu0 %v5652_v30  ;;  %7000 = vst [vmem:[#allocation7_spill] sm:$0xff] %v5753_v52  ;;  %v5761_v29 = vld [vmem:[#allocation2 + $0x2f] sm:$0xff]  ;;  %v7010_v28 = vmov 0  ;;  %v7014_v38 = vmov 0 }
 0x106   : > { %783 = vst.msk [vmem:[#allocation2 + $0x68] sm:$0xff] %vm6931_vm1, %v744_v44  ;;  %v745_v53 = vmax.f32 %v713_v45, 0.0  ;;  %5005 = vmatprep.subr.bf16.mxu1 %v5418_v23  ;;  %4861 = vmatprep.subr.bf16.mxu0 %v5420_v35  ;;  %7001 = vst [vmem:[#allocation8_spill] sm:$0xff] %v5761_v29  ;;  %v5763_v30 = vld [vmem:[#allocation2 + $0x31] sm:$0xff]  ;;  %v5774_v61 = vpack.c.bf16 %v5761_v29, %v2365_v56  ;;  %v1442_v10 = vld [vmem:[#allocation2 + $0x48] sm:$0xff]  ;;  %v7011_v28 = vsel %vm5815_vm7, 4294967295, %v7010_v28 }
 0x107   : > { %7002 = vst [vmem:[#allocation9_spill] sm:$0xff] %v5766_v55  ;;  %781 = vst.msk [vmem:[#allocation2 + $0x58] sm:$0xff] %vm6931_vm1, %v742_v48  ;;  %v743_v57 = vmax.f32 %v711_v50, 0.0  ;;  %v4805_v58 = vpop.f32.mrb[12].mxu0  ;;  %v1443_v59 = vld [vmem:[#allocation2 + $0x50] sm:$0xff]  ;;  %v1440_v0 = vld [vmem:[#allocation2 + $0x38] sm:$0xff] }
 0x108   : > { %7003 = vst [vmem:[#allocation10_spill] sm:$0xff] %v5774_v61  ;;  %784 = vst.msk [vmem:[#allocation2 + $0x70] sm:$0xff] %vm6931_vm1, %v745_v53  ;;  %v677_v62 = vmul.f32 %v4805_v58, %v5658_v31  ;;  %v577_v63 = vpop.f32.mrb[13].mxu0  ;;  %v1441_v3 = vld [vmem:[#allocation2 + $0x40] sm:$0xff]  ;;  %v2030_v6 = vsel %vm5738_vm5, %v5763_v30, 0.0  ;;  %v1470_v19 = vpack.c.bf16 %v1443_v59, %v1442_v10  ;;  %v7015_v38 = vsel %vm5822_vm8, 4294967295, %v7014_v38 }
 0x109   : > { %782 = vst.msk [vmem:[#allocation2 + $0x60] sm:$0xff] %vm6931_vm1, %v743_v57  ;;  %v675_v7 = vmul.f32 %v5658_v31, %v577_v63  ;;  %v4806_v8 = vpop.f32.mrb[14].mxu0  ;;  %v1469_v9 = vpack.c.bf16 %v1441_v3, %v1440_v0  ;;  %5006 = vmatpush3.bf16.msra.mxu1 %v5418_v23  ;;  %4862 = vmatpush3.bf16.msra.mxu0 %v5420_v35  ;;  %v5800_v20 = vld [vmem:[#allocation2 + $0x41] sm:$0xff]  ;;  %v5807_v2 = vld [vmem:[#allocation2 + $0x39] sm:$0xff]  ;;  %7012 = vst [vmem:[#allocation15_spill] sm:$0xff] %v7011_v28  ;;  %v919_v46 = vand.u32 15, %v817_v21 }
 0x10a   : > { %v5795_v15 = vpack.c.bf16 %v2030_v6, %v5778_v4  ;;  %v716_v16 = vadd.f32 %v5663_v33, %v677_v62  ;;  %v678_v17 = vmul.f32 %v4806_v8, %v5658_v31  ;;  %v580_v18 = vpop.f32.mrb[15].mxu0  ;;  %5039 = vmatprep.subr.bf16.mxu1 %v5759_v54  ;;  %v5809_v23 = vld [vmem:[#allocation2 + $0x37] sm:$0xff]  ;;  %v5819_v32 = vld [vmem:[#allocation2 + $0x3f] sm:$0xff]  ;;  %7016 = vst [vmem:[#allocation17_spill] sm:$0xff] %v7015_v38  ;;  %v2032_v39 = vsel %vm5780_vm6, %v5800_v20, 0.0  ;;  %v5845_v63 = vld [vmem:[#allocation2 + $0x49] sm:$0xff] }
 0x10b   : > { %v714_v22 = vadd.f32 %v5663_v33, %v675_v7  ;;  %v676_v1 = vmul.f32 %v5658_v31, %v580_v18  ;;  %4832 = vmatmul.mubr.msk.bf16.gmra.mrb[36].mxu0 %vm6931_vm1, %v1469_v9  ;;  %4975 = vmatprep.mubr.msk.bf16.mxu1 %vm6931_vm1, %v1469_v9  ;;  %7009 = vst [vmem:[#allocation14_spill] sm:$0xff] %v5809_v23  ;;  %7013 = vst [vmem:[#allocation16_spill] sm:$0xff] %v5819_v32  ;;  %v2367_v48 = vsel %vm5815_vm7, %v5809_v23, 0.0  ;;  %v7022_v21 = vmov 0 }
 0x10c   : > { %7008 = vst [vmem:[#allocation13_spill] sm:$0xff] %v5795_v15  ;;  %v748_v26 = vmax.f32 %v716_v16, 0.0  ;;  %v717_v27 = vadd.f32 %v5663_v33, %v678_v17  ;;  %4835 = vmatprep.mubr.msk.bf16.mxu0 %vm6931_vm1, %v1470_v19  ;;  %4976 = vmatmul.mubr.msk.bf16.gmra.mrb[4].mxu1 %vm6931_vm1, %v1470_v19  ;;  %v5834_v47 = vpack.c.bf16 %v2032_v39, %v5807_v2  ;;  %v933_v56 = vand.u32 15, %v819_v24 }
 0x10d   : > { %v746_v35 = vmax.f32 %v714_v22, 0.0  ;;  %v715_v37 = vadd.f32 %v5663_v33, %v676_v1  ;;  %4895 = vmatprep.subr.bf16.mxu0 %v5792_v12  ;;  %v5841_v57 = vpack.c.bf16 %v5819_v32, %v2367_v48  ;;  %7019 = vst [vmem:[#allocation20_spill] sm:$0xff] %v5845_v63  ;;  %v821_v0 = vadd.s32 120, %v5674_v49  ;;  %v1446_v9 = vld [vmem:[#allocation2 + $0x68] sm:$0xff] }
 0x10e   : > { %787 = vst.msk [vmem:[#allocation2 + $0x88] sm:$0xff] %vm6931_vm1, %v748_v26  ;;  %v749_v44 = vmax.f32 %v717_v27, 0.0  ;;  %v5831_v45 = vld [vmem:[#allocation2 + $0x51] sm:$0xff]  ;;  %7017 = vst [vmem:[#allocation18_spill] sm:$0xff] %v5834_v47  ;;  %vm5860_vm9 = vcmp.lt.s32.totalorder %v919_v46, 15  ;;  %v5869_v24 = vadd.s32 8, %v5674_v49 }
 0x10f   : > { %785 = vst.msk [vmem:[#allocation2 + $0x78] sm:$0xff] %vm6931_vm1, %v746_v35  ;;  %v747_v50 = vmax.f32 %v715_v37, 0.0  ;;  %v4809_v51 = vpop.f32.mrb[16].mxu0  ;;  %v1447_v53 = vld [vmem:[#allocation2 + $0x70] sm:$0xff]  ;;  %7018 = vst [vmem:[#allocation19_spill] sm:$0xff] %v5841_v57  ;;  %v1444_v60 = vld [vmem:[#allocation2 + $0x58] sm:$0xff] }
 0x110   : > { %788 = vst.msk [vmem:[#allocation2 + $0x90] sm:$0xff] %vm6931_vm1, %v749_v44  ;;  %v681_v58 = vmul.f32 %v4809_v51, %v5658_v31  ;;  %v593_v59 = vpop.f32.mrb[17].mxu0  ;;  %v1445_v62 = vld [vmem:[#allocation2 + $0x60] sm:$0xff]  ;;  %v2034_v3 = vsel %vm5822_vm8, %v5831_v45, 0.0  ;;  %v1472_v18 = vpack.c.bf16 %v1447_v53, %v1446_v9  ;;  %v7023_v21 = vsel %vm5860_vm9, 4294967295, %v7022_v21 }
 0x111   : > { %786 = vst.msk [vmem:[#allocation2 + $0x80] sm:$0xff] %vm6931_vm1, %v747_v50  ;;  %v679_v6 = vmul.f32 %v5658_v31, %v593_v59  ;;  %v4810_v7 = vpop.f32.mrb[18].mxu0  ;;  %v1471_v8 = vpack.c.bf16 %v1445_v62, %v1444_v60  ;;  %v5854_v10 = vpack.c.bf16 %v2034_v3, %v5845_v63  ;;  %v5858_v19 = vld [vmem:[#allocation2 + $0x61] sm:$0xff]  ;;  %7024 = vst [vmem:[#allocation23_spill] sm:$0xff] %v7023_v21  ;;  %v812_v26 = vadd.s32 48, %v5674_v49  ;;  %v5872_v27 = vld [vmem:[#allocation2 + $0x59] sm:$0xff] }
 0x112   : > { %v720_v11 = vadd.f32 %v5663_v33, %v681_v58  ;;  %v682_v16 = vmul.f32 %v4810_v7, %v5658_v31  ;;  %v596_v17 = vpop.f32.mrb[19].mxu0  ;;  %7021 = vst [vmem:[#allocation22_spill] sm:$0xff] %v5858_v19  ;;  %7025 = vst [vmem:[#allocation24_spill] sm:$0xff] %v5872_v27  ;;  %vm5877_vm10 = vcmp.lt.s32.totalorder %v933_v56, 15  ;;  %v947_v44 = vand.u32 15, %v821_v0  ;;  %v7165_v28 = vld [vmem:[#allocation17_spill] sm:$0xff] }
 0x113   : > { %7020 = vst [vmem:[#allocation21_spill] sm:$0xff] %v5854_v10  ;;  %v718_v22 = vadd.f32 %v5663_v33, %v679_v6  ;;  %v680_v1 = vmul.f32 %v5658_v31, %v596_v17  ;;  %4836 = vmatmul.mubr.msk.bf16.gmra.mrb[40].mxu0 %vm6931_vm1, %v1471_v8  ;;  %4979 = vmatprep.mubr.msk.bf16.mxu1 %vm6931_vm1, %v1471_v8  ;;  %v823_v50 = vadd.s32 136, %v5674_v49  ;;  %v2036_v51 = vsel %vm5860_vm9, %v5858_v19, 0.0  ;;  %v1286_v19 = vld [vmem:[#allocation2 + $0x7] sm:$0xff] }
 0x114   : > { %v752_v35 = vmax.f32 %v720_v11, 0.0  ;;  %v721_v37 = vadd.f32 %v5663_v33, %v682_v16  ;;  %4839 = vmatprep.mubr.msk.bf16.mxu0 %vm6931_vm1, %v1472_v18  ;;  %4980 = vmatmul.mubr.msk.bf16.gmra.mrb[8].mxu1 %vm6931_vm1, %v1472_v18  ;;  %v5890_v56 = vpack.c.bf16 %v2036_v51, %v5872_v27  ;;  %v884_v3 = vand.u32 15, %v812_v26  ;;  %v5899_v16 = vld [vmem:[#allocation2 + $0x69] sm:$0xff] }
 0x115   : > { %v750_v46 = vmax.f32 %v718_v22, 0.0  ;;  %v719_v48 = vadd.f32 %v5663_v33, %v680_v1  ;;  %v5895_v6 = vadd.s32 64, %v5674_v49  ;;  %7030 = vst [vmem:[#allocation27_spill] sm:$0xff] %v5899_v16  ;;  %vm5901_vm11 = vcmp.lt.s32.totalorder %v947_v44, 15 }
 0x116   : > { %791 = vst.msk [vmem:[#allocation2 + $0xa8] sm:$0xff] %vm6931_vm1, %v752_v35  ;;  %v753_v53 = vmax.f32 %v721_v37, 0.0  ;;  %v5887_v58 = vld [vmem:[#allocation2 + $0x71] sm:$0xff]  ;;  %7029 = vst [vmem:[#allocation26_spill] sm:$0xff] %v5890_v56  ;;  %v7031_v17 = vmov 0  ;;  %v1450_v35 = vld [vmem:[#allocation2 + $0x88] sm:$0xff] }
 0x117   : > { %7028 = vst [vmem:[#allocation25_spill] sm:$0xff] %v5887_v58  ;;  %789 = vst.msk [vmem:[#allocation2 + $0x98] sm:$0xff] %vm6931_vm1, %v750_v46  ;;  %v751_v59 = vmax.f32 %v719_v48, 0.0  ;;  %v4813_v60 = vpop.f32.mrb[20].mxu0  ;;  %v1451_v62 = vld [vmem:[#allocation2 + $0x90] sm:$0xff]  ;;  %v1448_v9 = vld [vmem:[#allocation2 + $0x78] sm:$0xff] }
 0x118   : > { %792 = vst.msk [vmem:[#allocation2 + $0xb0] sm:$0xff] %vm6931_vm1, %v753_v53  ;;  %v685_v7 = vmul.f32 %v4813_v60, %v5658_v31  ;;  %v609_v8 = vpop.f32.mrb[21].mxu0  ;;  %v1449_v11 = vld [vmem:[#allocation2 + $0x80] sm:$0xff]  ;;  %v7032_v17 = vsel %vm5901_vm11, 4294967295, %v7031_v17  ;;  %v2038_v18 = vsel %vm5877_vm10, %v5887_v58, 0.0  ;;  %v961_v37 = vand.u32 15, %v823_v50 }
 0x119   : > { %790 = vst.msk [vmem:[#allocation2 + $0xa0] sm:$0xff] %vm6931_vm1, %v751_v59  ;;  %v683_v22 = vmul.f32 %v5658_v31, %v609_v8  ;;  %v4814_v1 = vpop.f32.mrb[22].mxu0  ;;  %v1473_v26 = vpack.c.bf16 %v1449_v11, %v1448_v9  ;;  %v5911_v46 = vpack.c.bf16 %v2038_v18, %v5899_v16  ;;  %v1474_v53 = vpack.c.bf16 %v1451_v62, %v1450_v35  ;;  %v5915_v60 = vld [vmem:[#allocation2 + $0x81] sm:$0xff]  ;;  %v5928_v9 = vld [vmem:[#allocation2 + $0x79] sm:$0xff]  ;;  %v5966_v56 = vld [vmem:[#allocation2 + $0x89] sm:$0xff] }
 0x11a   : > { %v724_v44 = vadd.f32 %v5663_v33, %v685_v7  ;;  %v686_v48 = vmul.f32 %v4814_v1, %v5658_v31  ;;  %v612_v51 = vpop.f32.mrb[23].mxu0  ;;  %7034 = vst [vmem:[#allocation29_spill] sm:$0xff] %v5915_v60  ;;  %v825_v0 = vadd.s32 152, %v5674_v49  ;;  %vm5922_vm12 = vcmp.ge.s32.totalorder %v884_v3, 1  ;;  %v5926_v7 = vld [vmem:[#allocation2 + $0x47] sm:$0xff]  ;;  %7039 = vst [vmem:[#allocation32_spill] sm:$0xff] %v5928_v9 }
 0x11b   : > { %7033 = vst [vmem:[#allocation28_spill] sm:$0xff] %v5911_v46  ;;  %v722_v59 = vadd.f32 %v5663_v33, %v683_v22  ;;  %v684_v8 = vmul.f32 %v5658_v31, %v612_v51  ;;  %4840 = vmatmul.mubr.msk.bf16.gmra.mrb[44].mxu0 %vm6931_vm1, %v1473_v26  ;;  %4983 = vmatprep.mubr.msk.bf16.mxu1 %vm6931_vm1, %v1473_v26  ;;  %v7035_v50 = vmov 0  ;;  %7038 = vst [vmem:[#allocation31_spill] sm:$0xff] %v5926_v7  ;;  %v827_v62 = vadd.s32 168, %v5674_v49  ;;  %v5947_v51 = vld [vmem:[#allocation2 + $0x4f] sm:$0xff] }
 0x11c   : > { %v7036_v50 = vsel %vm5922_vm12, 4294967295, %v7035_v50  ;;  %v756_v11 = vmax.f32 %v724_v44, 0.0  ;;  %v725_v18 = vadd.f32 %v5663_v33, %v686_v48  ;;  %4843 = vmatprep.mubr.msk.bf16.mxu0 %vm6931_vm1, %v1474_v53  ;;  %4984 = vmatmul.mubr.msk.bf16.gmra.mrb[12].mxu1 %vm6931_vm1, %v1474_v53  ;;  %v898_v22 = vand.u32 15, %v5895_v6  ;;  %7042 = vst [vmem:[#allocation33_spill] sm:$0xff] %v5947_v51 }
 0x11d   : > { %7037 = vst [vmem:[#allocation30_spill] sm:$0xff] %v7036_v50  ;;  %v5936_v3 = vadd.s32 80, %v5674_v49  ;;  %v754_v1 = vmax.f32 %v722_v59, 0.0  ;;  %v723_v26 = vadd.f32 %v5663_v33, %v684_v8  ;;  %vm5939_vm13 = vcmp.lt.s32.totalorder %v961_v37, 15  ;;  %v7164_v50 = vld [vmem:[#allocation22_spill] sm:$0xff] }
 0x11e   : > { %v7040_v35 = vmov 0  ;;  %v2040_v44 = vsel %vm5901_vm11, %v5915_v60, 0.0  ;;  %795 = vst.msk [vmem:[#allocation2 + $0xc8] sm:$0xff] %vm6931_vm1, %v756_v11  ;;  %v757_v48 = vmax.f32 %v725_v18, 0.0  ;;  %v5949_v6 = vld [vmem:[#allocation2 + $0x91] sm:$0xff]  ;;  %v975_v53 = vand.u32 15, %v825_v0 }
 0x11f   : > { %v7041_v35 = vsel %vm5939_vm13, 4294967295, %v7040_v35  ;;  %v5952_v59 = vpack.c.bf16 %v2040_v44, %v5928_v9  ;;  %v2369_v37 = vsel %vm5922_vm12, %v5926_v7, 0.0  ;;  %793 = vst.msk [vmem:[#allocation2 + $0xb8] sm:$0xff] %vm6931_vm1, %v754_v1  ;;  %v755_v8 = vmax.f32 %v723_v26, 0.0  ;;  %v4817_v57 = vpop.f32.mrb[24].mxu0  ;;  %v1455_v61 = vld [vmem:[#allocation2 + $0xb0] sm:$0xff] }
 0x120   : > { %v5959_v11 = vadd.s32 96, %v5674_v49  ;;  %v989_v18 = vand.u32 15, %v827_v62  ;;  %v5962_v52 = vpack.c.bf16 %v5947_v51, %v2369_v37  ;;  %796 = vst.msk [vmem:[#allocation2 + $0xd0] sm:$0xff] %vm6931_vm1, %v757_v48  ;;  %v689_v0 = vmul.f32 %v4817_v57, %v5658_v31  ;;  %v625_v44 = vpop.f32.mrb[25].mxu0  ;;  %v1453_v46 = vld [vmem:[#allocation2 + $0xa0] sm:$0xff]  ;;  %v1454_v48 = vld [vmem:[#allocation2 + $0xa8] sm:$0xff] }
 0x121   : > { %7043 = vst [vmem:[#allocation34_spill] sm:$0xff] %v5952_v59  ;;  %v1452_v59 = vld [vmem:[#allocation2 + $0x98] sm:$0xff]  ;;  %v829_v1 = vadd.s32 184, %v5674_v49  ;;  %v2042_v26 = vsel %vm5939_vm13, %v5949_v6, 0.0  ;;  %794 = vst.msk [vmem:[#allocation2 + $0xc0] sm:$0xff] %vm6931_vm1, %v755_v8  ;;  %v687_v62 = vmul.f32 %v5658_v31, %v625_v44  ;;  %v4818_v37 = vpop.f32.mrb[26].mxu0  ;;  %v1476_v9 = vpack.c.bf16 %v1455_v61, %v1454_v48 }
 0x122   : > { %7044 = vst [vmem:[#allocation35_spill] sm:$0xff] %v5962_v52  ;;  %v1475_v52 = vpack.c.bf16 %v1453_v46, %v1452_v59  ;;  %vm5974_vm14 = vcmp.ge.s32.totalorder %v898_v22, 1  ;;  %v7045_v57 = vmov 0  ;;  %v5979_v10 = vpack.c.bf16 %v2042_v26, %v5966_v56  ;;  %v628_v55 = vpop.f32.mrb[27].mxu0  ;;  %v5983_v16 = vld [vmem:[#allocation2 + $0xa1] sm:$0xff]  ;;  %v5997_v44 = vld [vmem:[#allocation2 + $0x99] sm:$0xff] }
 0x123   : > { %v7046_v57 = vsel %vm5974_vm14, 4294967295, %v7045_v57  ;;  %v728_v47 = vadd.f32 %v5663_v33, %v689_v0  ;;  %v690_v15 = vmul.f32 %v4818_v37, %v5658_v31  ;;  %vm5985_vm15 = vcmp.lt.s32.totalorder %v975_v53, 15  ;;  %v5994_v0 = vld [vmem:[#allocation2 + $0x57] sm:$0xff] }
 0x124   : > { %7047 = vst [vmem:[#allocation36_spill] sm:$0xff] %v7046_v57  ;;  %7048 = vst [vmem:[#allocation37_spill] sm:$0xff] %v5979_v10  ;;  %v7049_v8 = vmov 0  ;;  %v726_v46 = vadd.f32 %v5663_v33, %v687_v62  ;;  %v688_v22 = vmul.f32 %v5658_v31, %v628_v55  ;;  %4844 = vmatmul.mubr.msk.bf16.gmra.mrb[48].mxu0 %vm6931_vm1, %v1475_v52  ;;  %4987 = vmatprep.mubr.msk.bf16.mxu1 %vm6931_vm1, %v1475_v52  ;;  %v912_v59 = vand.u32 15, %v5936_v3  ;;  %v6002_v55 = vld [vmem:[#allocation2 + $0x5f] sm:$0xff] }
 0x125   : > { %v7050_v8 = vsel %vm5985_vm15, 4294967295, %v7049_v8  ;;  %7051 = vst [vmem:[#allocation38_spill] sm:$0xff] %v5994_v0  ;;  %v926_v61 = vand.u32 15, %v5959_v11  ;;  %v760_v53 = vmax.f32 %v728_v47, 0.0  ;;  %v729_v26 = vadd.f32 %v5663_v33, %v690_v15  ;;  %4847 = vmatprep.mubr.msk.bf16.mxu0 %vm6931_vm1, %v1476_v9  ;;  %4988 = vmatmul.mubr.msk.bf16.gmra.mrb[16].mxu1 %vm6931_vm1, %v1476_v9  ;;  %7052 = vst [vmem:[#allocation39_spill] sm:$0xff] %v6002_v55 }
 0x126   : > { %vm6004_vm0 = vcmp.lt.s32.totalorder %v989_v18, 15  ;;  %v7053_v62 = vmov 0  ;;  %v1003_v52 = vand.u32 15, %v829_v1  ;;  %v758_v3 = vmax.f32 %v726_v46, 0.0  ;;  %v6014_v9 = vld [vmem:[#allocation2 + $0xb1] sm:$0xff] }
 0x127   : > { %v7054_v62 = vsel %vm6004_vm0, 4294967295, %v7053_v62  ;;  %v727_v37 = vadd.f32 %v5663_v33, %v688_v22  ;;  %v831_v11 = vadd.s32 200, %v5674_v49  ;;  %v2044_v15 = vsel %vm5985_vm15, %v5983_v16, 0.0  ;;  %799 = vst.msk [vmem:[#allocation2 + $0xe8] sm:$0xff] %vm6931_vm1, %v760_v53  ;;  %v4821_v22 = vpop.f32.mrb[28].mxu0  ;;  %v1459_v10 = vld [vmem:[#allocation2 + $0xd0] sm:$0xff] }
 0x128   : > { %7055 = vst [vmem:[#allocation40_spill] sm:$0xff] %v7054_v62  ;;  %v761_v47 = vmax.f32 %v729_v26, 0.0  ;;  %v833_v18 = vadd.s32 216, %v5674_v49  ;;  %v6018_v48 = vpack.c.bf16 %v2044_v15, %v5997_v44  ;;  %v2371_v1 = vsel %vm5974_vm14, %v5994_v0, 0.0  ;;  %797 = vst.msk [vmem:[#allocation2 + $0xd8] sm:$0xff] %vm6931_vm1, %v758_v3  ;;  %v1456_v21 = vld [vmem:[#allocation2 + $0xb8] sm:$0xff] }
 0x129   : > { %v759_v46 = vmax.f32 %v727_v37, 0.0  ;;  %v820_v60 = vadd.s32 112, %v5674_v49  ;;  %v822_v53 = vadd.s32 128, %v5674_v49  ;;  %v6027_v26 = vpack.c.bf16 %v6002_v55, %v2371_v1  ;;  %v1457_v58 = vld [vmem:[#allocation2 + $0xc0] sm:$0xff]  ;;  %v6031_v0 = vld [vmem:[#allocation2 + $0xa9] sm:$0xff] }
 0x12a   : > { %7056 = vst [vmem:[#allocation41_spill] sm:$0xff] %v6018_v48  ;;  %800 = vst.msk [vmem:[#allocation2 + $0xf0] sm:$0xff] %vm6931_vm1, %v761_v47  ;;  %v693_v15 = vmul.f32 %v4821_v22, %v5658_v31  ;;  %v641_v48 = vpop.f32.mrb[29].mxu0  ;;  %vm6033_vm9 = vcmp.lt.s32.totalorder %v1003_v52, 15  ;;  %v7058_v3 = vmov 0  ;;  %v2046_v37 = vsel %vm6004_vm0, %v6014_v9, 0.0 }
 0x12b   : > { %7057 = vst [vmem:[#allocation42_spill] sm:$0xff] %v6027_v26  ;;  %v7059_v3 = vsel %vm6033_vm9, 4294967295, %v7058_v3  ;;  %798 = vst.msk [vmem:[#allocation2 + $0xe0] sm:$0xff] %vm6931_vm1, %v759_v46  ;;  %v691_v1 = vmul.f32 %v5658_v31, %v641_v48  ;;  %v4822_v47 = vpop.f32.mrb[30].mxu0  ;;  %v1477_v26 = vpack.c.bf16 %v1457_v58, %v1456_v21  ;;  %v1458_v22 = vld [vmem:[#allocation2 + $0xc8] sm:$0xff]  ;;  %v1017_v55 = vand.u32 15, %v831_v11 }
 0x12c   : > { %7060 = vst [vmem:[#allocation43_spill] sm:$0xff] %v7059_v3  ;;  %v6043_v27 = vpack.c.bf16 %v2046_v37, %v6031_v0  ;;  %v732_v52 = vadd.f32 %v5663_v33, %v693_v15  ;;  %v694_v63 = vmul.f32 %v4822_v47, %v5658_v31  ;;  %v644_v51 = vpop.f32.mrb[31].mxu0  ;;  %v1478_v32 = vpack.c.bf16 %v1459_v10, %v1458_v22  ;;  %v6051_v46 = vld [vmem:[#allocation2 + $0xc1] sm:$0xff]  ;;  %v6061_v15 = vld [vmem:[#allocation2 + $0xb9] sm:$0xff] }
 0x12d   : > { %vm6047_vm8 = vcmp.ge.s32.totalorder %v912_v59, 1  ;;  %v7062_v38 = vmov 0  ;;  %v1031_v48 = vand.u32 15, %v833_v18  ;;  %v730_v21 = vadd.f32 %v5663_v33, %v691_v1  ;;  %4848 = vmatmul.mubr.msk.bf16.gmra.mrb[52].mxu0 %vm6931_vm1, %v1477_v26  ;;  %4991 = vmatprep.mubr.msk.bf16.mxu1 %vm6931_vm1, %v1477_v26  ;;  %7067 = vst [vmem:[#allocation46_spill] sm:$0xff] %v6061_v15  ;;  %v6120_v3 = vld [vmem:[#allocation2 + $0x77] sm:$0xff]  ;;  %v6129_v62 = vld [vmem:[#allocation2 + $0x7f] sm:$0xff] }
 0x12e   : > { %7061 = vst [vmem:[#allocation44_spill] sm:$0xff] %v6043_v27  ;;  %v7063_v38 = vsel %vm6047_vm8, 4294967295, %v7062_v38  ;;  %v692_v58 = vmul.f32 %v5658_v31, %v644_v51  ;;  %vm6057_vm0 = vcmp.ge.s32.totalorder %v926_v61, 1  ;;  %v7065_v11 = vmov 0  ;;  %4851 = vmatprep.mubr.msk.bf16.mxu0 %vm6931_vm1, %v1478_v32  ;;  %4992 = vmatmul.mubr.msk.bf16.gmra.mrb[20].mxu1 %vm6931_vm1, %v1478_v32  ;;  %v6079_v32 = vld [vmem:[#allocation2 + $0x67] sm:$0xff]  ;;  %7088 = vst [vmem:[#allocation56_spill] sm:$0xff] %v6120_v3 }
 0x12f   : > { %7064 = vst [vmem:[#allocation45_spill] sm:$0xff] %v7063_v38  ;;  %v7066_v11 = vsel %vm6057_vm0, 4294967295, %v7065_v11  ;;  %v940_v10 = vand.u32 15, %v820_v60  ;;  %v954_v59 = vand.u32 15, %v822_v53  ;;  %v764_v37 = vmax.f32 %v732_v52, 0.0  ;;  %7071 = vst [vmem:[#allocation48_spill] sm:$0xff] %v6079_v32 }
 0x130   : > { %v733_v47 = vadd.f32 %v5663_v33, %v694_v63  ;;  %v6067_v31 = vadd.s32 144, %v5674_v49  ;;  %v835_v51 = vadd.s32 232, %v5674_v49  ;;  %v762_v61 = vmax.f32 %v730_v21, 0.0  ;;  %v6084_v1 = vld [vmem:[#allocation2 + $0xd1] sm:$0xff]  ;;  %v1462_v27 = vld [vmem:[#allocation2 + $0xe8] sm:$0xff]  ;;  %7090 = vst [vmem:[#allocation58_spill] sm:$0xff] %v6129_v62 }
 0x131   : > { %v731_v18 = vadd.f32 %v5663_v33, %v692_v58  ;;  %vm6071_vm15 = vcmp.lt.s32.totalorder %v1017_v55, 15  ;;  %v7068_v60 = vmov 0  ;;  %v2048_v63 = vsel %vm6033_vm9, %v6051_v46, 0.0  ;;  %803 = vst.msk [vmem:[#allocation2 + $0x108] sm:$0xff] %vm6931_vm1, %v764_v37  ;;  %v1460_v52 = vld [vmem:[#allocation2 + $0xd8] sm:$0xff]  ;;  %v1463_v21 = vld [vmem:[#allocation2 + $0xf0] sm:$0xff] }
 0x132   : > { %v7069_v60 = vsel %vm6071_vm15, 4294967295, %v7068_v60  ;;  %v765_v53 = vmax.f32 %v733_v47, 0.0  ;;  %v6082_v26 = vadd.s32 160, %v5674_v49  ;;  %vm6086_vm13 = vcmp.lt.s32.totalorder %v1031_v48, 15  ;;  %801 = vst.msk [vmem:[#allocation2 + $0xf8] sm:$0xff] %vm6931_vm1, %v762_v61  ;;  %v1461_v61 = vld [vmem:[#allocation2 + $0xe0] sm:$0xff] }
 0x133   : > { %7070 = vst [vmem:[#allocation47_spill] sm:$0xff] %v7069_v60  ;;  %v7072_v33 = vmov 0  ;;  %v6091_v55 = vpack.c.bf16 %v2048_v63, %v6061_v15  ;;  %v763_v22 = vmax.f32 %v731_v18, 0.0  ;;  %v7076_v58 = vand.u32 15, %v5869_v24  ;;  %v6108_v63 = vld [vmem:[#allocation2 + $0xc9] sm:$0xff]  ;;  %v6111_v18 = vld [vmem:[#allocation2 + $0xd9] sm:$0xff] }
 0x134   : > { %v7073_v33 = vsel %vm6086_vm13, 4294967295, %v7072_v33  ;;  %v7077_v37 = vmov 0  ;;  %vm6100_vm11 = vcmp.ge.s32.totalorder %v940_v10, 1  ;;  %v7080_v47 = vmov 0  ;;  %7086 = vst [vmem:[#allocation54_spill] sm:$0xff] %v6108_v63  ;;  %804 = vst.msk [vmem:[#allocation2 + $0x110] sm:$0xff] %vm6931_vm1, %v765_v53 }
 0x135   : > { %7074 = vst [vmem:[#allocation49_spill] sm:$0xff] %v7073_v33  ;;  %7075 = vst [vmem:[#allocation50_spill] sm:$0xff] %v6091_v55  ;;  %vm6096_vm9 = vcmp.lt.s32.totalorder %v7076_v58, 15  ;;  %v7081_v47 = vsel %vm6100_vm11, 4294967295, %v7080_v47  ;;  %vm6104_vm6 = vcmp.ge.s32.totalorder %v954_v59, 1  ;;  %v7083_v48 = vmov 0 }
 0x136   : > { %v7078_v37 = vsel %vm6096_vm9, 4294967295, %v7077_v37  ;;  %7082 = vst [vmem:[#allocation52_spill] sm:$0xff] %v7081_v47  ;;  %v7084_v48 = vsel %vm6104_vm6, 4294967295, %v7083_v48  ;;  %v6113_v24 = vld [vmem:[#allocation2 + $0xe1] sm:$0xff]  ;;  %v1045_v58 = vand.u32 15, %v835_v51  ;;  %v837_v55 = vadd.s32 248, %v5674_v49 }
 0x137   : > { %7079 = vst [vmem:[#allocation51_spill] sm:$0xff] %v7078_v37  ;;  %7085 = vst [vmem:[#allocation53_spill] sm:$0xff] %v7084_v48  ;;  %v2050_v10 = vsel %vm6071_vm15, %v6084_v1, 0.0  ;;  %v1479_v59 = vpack.c.bf16 %v1461_v61, %v1460_v52  ;;  %v968_v53 = vand.u32 15, %v6067_v31  ;;  %v2052_v51 = vsel %vm6086_vm13, %v6113_v24, 0.0  ;;  %v6131_v60 = vld [vmem:[#allocation2 + $0x87] sm:$0xff] }
 0x138   : > { %7087 = vst [vmem:[#allocation55_spill] sm:$0xff] %v6113_v24  ;;  %802 = vst.msk [vmem:[#allocation2 + $0x100] sm:$0xff] %vm6931_vm1, %v763_v22  ;;  %v6124_v15 = vpack.c.bf16 %v2050_v10, %v6108_v63  ;;  %v1480_v12 = vpack.c.bf16 %v1463_v21, %v1462_v27  ;;  %v6133_v22 = vld [vmem:[#allocation2 + $0x97] sm:$0xff]  ;;  %v982_v52 = vand.u32 15, %v6082_v26  ;;  %v828_v61 = vadd.s32 176, %v5674_v49  ;;  %v6140_v10 = vld [vmem:[#allocation2 + $0x6f] sm:$0xff] }
 0x139   : > { %7091 = vst [vmem:[#allocation59_spill] sm:$0xff] %v6131_v60  ;;  %7092 = vst [vmem:[#allocation60_spill] sm:$0xff] %v6133_v22  ;;  %v830_v31 = vadd.s32 192, %v5674_v49  ;;  %4852 = vmatmul.mubr.msk.bf16.gmra.mrb[56].mxu0 %vm6931_vm1, %v1479_v59  ;;  %4995 = vmatprep.mubr.msk.bf16.mxu1 %vm6931_vm1, %v1479_v59  ;;  %v832_v27 = vadd.s32 208, %v5674_v49  ;;  %v6146_v21 = vadd.s32 224, %v5674_v49  ;;  %v6149_v33 = vpack.c.bf16 %v2052_v51, %v6111_v18  ;;  %v6168_v38 = vld [vmem:[#allocation2 + $0x8f] sm:$0xff] }
 0x13a   : > { %7089 = vst [vmem:[#allocation57_spill] sm:$0xff] %v6124_v15  ;;  %v6142_v15 = vld [vmem:[#allocation2 + $0x9f] sm:$0xff]  ;;  %v2373_v26 = vsel %vm6047_vm8, %v6079_v32, 0.0  ;;  %4855 = vmatprep.mubr.msk.bf16.mxu0 %vm6931_vm1, %v1480_v12  ;;  %4996 = vmatmul.mubr.msk.bf16.gmra.mrb[24].mxu1 %vm6931_vm1, %v1480_v12  ;;  %vm6156_vm13 = vcmp.lt.s32.totalorder %v1045_v58, 15  ;;  %v7095_v59 = vmov 0  ;;  %v1059_v24 = vand.u32 15, %v837_v55 }
 0x13b   : > { %7093 = vst [vmem:[#allocation61_spill] sm:$0xff] %v6142_v15  ;;  %7094 = vst [vmem:[#allocation62_spill] sm:$0xff] %v6149_v33  ;;  %v7096_v59 = vsel %vm6156_vm13, 4294967295, %v7095_v59  ;;  %v6161_v63 = vpack.c.bf16 %v6140_v10, %v2373_v26  ;;  %v2375_v51 = vsel %vm6057_vm0, %v6120_v3, 0.0  ;;  %v1287_v33 = vld [vmem:[#allocation2 + $0xf] sm:$0xff]  ;;  %v1382_v32 = vsel %vm5693_vm2, %v1286_v19, 0.0 }
 0x13c   : > { %7098 = vst [vmem:[#allocation64_spill] sm:$0xff] %v6168_v38  ;;  %v6171_v12 = vpack.c.bf16 %v6129_v62, %v2375_v51  ;;  %v2377_v55 = vsel %vm6100_vm11, %v6131_v60, 0.0  ;;  %v2379_v58 = vsel %vm6104_vm6, %v6133_v22, 0.0  ;;  %v996_v26 = vand.u32 15, %v828_v61  ;;  %v2700_v51 = vld [vmem:[#allocation2 + $0x110] sm:$0xff]  ;;  %v1464_v22 = vld [vmem:[#allocation2 + $0xf8] sm:$0xff] }
 0x13d   : > { %7097 = vst [vmem:[#allocation63_spill] sm:$0xff] %v6161_v63  ;;  %v6179_v63 = vld [vmem:[#allocation2 + $0xf1] sm:$0xff]  ;;  %v836_v3 = vadd.s32 240, %v5674_v49  ;;  %v6183_v19 = vpack.c.bf16 %v6168_v38, %v2377_v55  ;;  %v6186_v13 = vpack.c.bf16 %v6142_v15, %v2379_v58  ;;  %v1010_v62 = vand.u32 15, %v830_v31  ;;  %v6190_v47 = vld [vmem:[#allocation2 + $0xe9] sm:$0xff] }
 0x13e   : > { %7099 = vst [vmem:[#allocation65_spill] sm:$0xff] %v6171_v12  ;;  %v6188_v12 = vld [vmem:[#allocation2 + $0xa7] sm:$0xff]  ;;  %v1024_v60 = vand.u32 15, %v832_v27  ;;  %v2054_v61 = vsel %vm6156_vm13, %v6179_v63, 0.0  ;;  %v3008_v49 = vsel %vm6096_vm9, %v5716_v34, 0.0  ;;  %v1414_v55 = vpack.c.bf16 %v1287_v33, %v1382_v32  ;;  %v6211_v38 = vld [vmem:[#allocation2 + $0xb7] sm:$0xff] }
 0x13f   : > { %7100 = vst [vmem:[#allocation66_spill] sm:$0xff] %v6183_v19  ;;  %7101 = vst [vmem:[#allocation67_spill] sm:$0xff] %v6186_v13  ;;  %v1465_v48 = vld [vmem:[#allocation2 + $0x100] sm:$0xff]  ;;  %vm6200_vm1 = vcmp.lt.s32.totalorder %v1059_v24, 15  ;;  %v7103_v13 = vmov 0  ;;  %v6205_v31 = vpack.c.bf16 %v2054_v61, %v6190_v47  ;;  %v2699_v19 = vld [vmem:[#allocation2 + $0x108] sm:$0xff] }
 0x140   : > { %7102 = vst [vmem:[#allocation68_spill] sm:$0xff] %v6188_v12  ;;  %v6198_v58 = vld [vmem:[#allocation2 + $0x101] sm:$0xff]  ;;  %v7104_v13 = vsel %vm6200_vm1, 4294967295, %v7103_v13  ;;  %v1481_v27 = vpack.c.bf16 %v1465_v48, %v1464_v22  ;;  %vm6207_vm2 = vcmp.ge.s32.totalorder %v968_v53, 1  ;;  %v1038_v34 = vand.u32 15, %v6146_v21  ;;  %v6214_v32 = vld [vmem:[#allocation2 + $0xf9] sm:$0xff] }
 0x141   : > { %7105 = vst [vmem:[#allocation69_spill] sm:$0xff] %v7104_v13  ;;  %7106 = vst [vmem:[#allocation70_spill] sm:$0xff] %v6205_v31  ;;  %v2716_v33 = vpack.c.bf16 %v2700_v51, %v2699_v19  ;;  %vm6216_vm9 = vcmp.ge.s32.totalorder %v982_v52, 1  ;;  %vm6220_vm6 = vcmp.ge.s32.totalorder %v996_v26, 1  ;;  %v6224_v48 = vld [vmem:[#allocation2 + $0xbf] sm:$0xff]  ;;  %v6226_v53 = vld [vmem:[#allocation2 + $0xc7] sm:$0xff]  ;;  %v3039_v52 = vpack.c.bf16 %v3008_v49, %v5730_v40 }
 0x142   : > { %v6228_v22 = vld [vmem:[#allocation2 + $0xd7] sm:$0xff]  ;;  %v1052_v31 = vand.u32 15, %v836_v3  ;;  %vm7114_vm11 = vcmask 261120   ;;  %v6233_v21 = vld [vmem:[#allocation2 + $0xaf] sm:$0xff]  ;;  %vm6235_vm8 = vcmp.ge.s32.totalorder %v1010_v62, 1  ;;  %v6239_v19 = vld [vmem:[#allocation2 + $0xdf] sm:$0xff] }
 0x143   : > { %7113 = vst [vmem:[#allocation71_spill] sm:$0xff] %v6228_v22  ;;  %4856 = vmatmul.mubr.msk.bf16.gmra.mrb[60].mxu0 %vm7114_vm11, %v1481_v27  ;;  %vm7115_vm0 = vmmov %vm7114_vm11  ;;  %v2056_v51 = vsel %vm6200_vm1, %v6198_v58, 0.0  ;;  %v2381_v3 = vsel %vm6207_vm2, %v6188_v12, 0.0  ;;  %vm6249_vm13 = vcmp.ge.s32.totalorder %v1024_v60, 1  ;;  %v7119_v40 = vmov 0  ;;  %v6253_v62 = vld [vmem:[#allocation2 + $0xe7] sm:$0xff] }
 0x144   : > { %4999 = vmatprep.mubr.msk.bf16.mxu1 %vm7115_vm0, %v1481_v27  ;;  %vm7118_vm11 = vmmov %vm7115_vm0  ;;  %4863 = vmatprep.mubr.msk.bf16.mxu0 %vm7115_vm0, %v1414_v55  ;;  %v7120_v40 = vsel %vm6249_vm13, 4294967295, %v7119_v40  ;;  %v6255_v49 = vld [vmem:[#allocation2 + $0xf7] sm:$0xff]  ;;  %v6258_v27 = vpack.c.bf16 %v2056_v51, %v6214_v32  ;;  %v6261_v13 = vpack.c.bf16 %v6233_v21, %v2381_v3  ;;  %v6267_v60 = vld [vmem:[#allocation2 + $0xcf] sm:$0xff]  ;;  %v7124_v55 = vmov 0 }
 0x145   : > { %5000 = vmatmul.mubr.msk.bf16.gmra.mrb[28].mxu1 %vm7118_vm11, %v2716_v33  ;;  %v2383_v33 = vsel %vm6216_vm9, %v6211_v38, 0.0  ;;  %vm7123_vm11 = vmmov %vm7115_vm0  ;;  %vm6269_vm0 = vcmp.ge.s32.totalorder %v1038_v34, 1  ;;  %v6273_v37 = vld [vmem:[#allocation2 + $0xff] sm:$0xff]  ;;  %v6275_v12 = vld [vmem:[#allocation2 + $0x107] sm:$0xff]  ;;  %v2385_v3 = vsel %vm6220_vm6, %v6226_v53, 0.0  ;;  %v1384_v34 = vsel %vm5732_vm4, %v5697_v14, 0.0 }
 0x146   : > { %7121 = vst [vmem:[#allocation72_spill] sm:$0xff] %v6258_v27  ;;  %7122 = vst [vmem:[#allocation73_spill] sm:$0xff] %v6261_v13  ;;  %5007 = vmatprep.mubr.msk.bf16.mxu1 %vm7123_vm11, %v3039_v52  ;;  %v7125_v55 = vsel %vm6269_vm0, 4294967295, %v7124_v55  ;;  %v6278_v51 = vpack.c.bf16 %v6224_v48, %v2383_v33  ;;  %v2387_v52 = vsel %vm6235_vm8, %v6228_v22, 0.0  ;;  %vm6289_vm11 = vcmp.ge.s32.totalorder %v1052_v31, 1  ;;  %v6305_v41 = vld [vmem:[#allocation2 + $0xef] sm:$0xff] }
 0x147   : > { %7126 = vst [vmem:[#allocation74_spill] sm:$0xff] %v6273_v37  ;;  %7127 = vst [vmem:[#allocation75_spill] sm:$0xff] %v6275_v12  ;;  %v7129_v13 = vmov 0  ;;  %v6294_v27 = vpack.c.bf16 %v6267_v60, %v2385_v3  ;;  %v6297_v33 = vpack.c.bf16 %v6239_v19, %v2387_v52  ;;  %v3010_v22 = vsel %vm5710_vm3, %v5763_v30, 0.0  ;;  %v6316_v52 = vld [vmem:[#allocation2 + $0x10f] sm:$0xff] }
 0x148   : > { %7128 = vst [vmem:[#allocation76_spill] sm:$0xff] %v6278_v51  ;;  %v7130_v13 = vsel %vm6289_vm11, 4294967295, %v7129_v13  ;;  %v1386_v51 = vsel %vm5815_vm7, %v5736_v42, 0.0  ;;  %v2389_v14 = vsel %vm6249_vm13, %v6253_v62, 0.0  ;;  %v2391_v31 = vsel %vm6269_vm0, %v6255_v49, 0.0  ;;  %7134 = vst [vmem:[#allocation80_spill] sm:$0xff] %v6316_v52 }
 0x149   : > { %7131 = vst [vmem:[#allocation77_spill] sm:$0xff] %v7130_v13  ;;  %7132 = vst [vmem:[#allocation78_spill] sm:$0xff] %v6294_v27  ;;  %v3012_v3 = vsel %vm5738_vm5, %v5800_v20, 0.0  ;;  %v6319_v42 = vpack.c.bf16 %v6305_v41, %v2389_v14  ;;  %v6322_v30 = vpack.c.bf16 %v6273_v37, %v2391_v31  ;;  %v2393_v25 = vsel %vm6289_vm11, %v6275_v12, 0.0  ;;  %v5422_v14 = vld [vmem:[%s6860_s6 + $0x68] sm:$0xff]   ;;  %v7171_v37 = vld [vmem:[#allocation20_spill] sm:$0xff] }
 0x14a   : > { %7133 = vst [vmem:[#allocation79_spill] sm:$0xff] %v6297_v33  ;;  %v1415_v33 = vpack.c.bf16 %v5721_v36, %v1384_v34  ;;  %v6329_v27 = vpack.c.bf16 %v6316_v52, %v2393_v25  ;;  %v1416_v43 = vpack.c.bf16 %v5761_v29, %v1386_v51  ;;  %v3040_v20 = vpack.c.bf16 %v3010_v22, %v5778_v4  ;;  %v5424_v36 = vld [vmem:[%s6860_s6 + $0x28] sm:$0xff]   ;;  %v6355_v22 = vld [vmem:[#allocation2 + $0x111] sm:$0xff] }
 0x14b   : > { %7135 = vst [vmem:[#allocation81_spill] sm:$0xff] %v6319_v42  ;;  %7136 = vst [vmem:[#allocation82_spill] sm:$0xff] %v6322_v30  ;;  %vm7138_vm5 = vcmask 261120   ;;  %v3041_v31 = vpack.c.bf16 %v3012_v3, %v5807_v2  ;;  %v1388_v30 = vsel %vm5922_vm12, %v5809_v23, 0.0  ;;  %v1390_v25 = vsel %vm5974_vm14, %v5926_v7, 0.0  ;;  %v7158_v52 = vld [vmem:[#allocation47_spill] sm:$0xff] }
 0x14c   : > { %7137 = vst [vmem:[#allocation83_spill] sm:$0xff] %v6329_v27  ;;  %4864 = vmatmul.mubr.msk.bf16.vlgmr.msra.gmra.mrb[32].mxu0 %vm7138_vm5, %v1415_v33  ;;  %v4002_v4 = vsel %vm5877_vm10, %v5949_v6, 0.0  ;;  %vm7139_vm3 = vmmov %vm7138_vm5  ;;  %vm7141_vm7 = vnez %v7005_v5  ;;  %vm7143_vm14 = vnez %v7032_v17  ;;  %vm7144_vm12 = vnez %v7041_v35  ;;  %v7155_v5 = vld [vmem:[#allocation55_spill] sm:$0xff]  ;;  %v7203_v17 = vld [vmem:[#allocation60_spill] sm:$0xff] }
 0x14d   : > { %4867 = vmatprep.mubr.msk.bf16.mxu0 %vm7139_vm3, %v1416_v43  ;;  %vm7140_vm5 = vmmov %vm7139_vm3  ;;  %v3014_v2 = vsel %vm7141_vm7, %v5831_v45, 0.0  ;;  %v6358_v51 = vpack.c.bf16 %v4002_v4, %v5966_v56  ;;  %v4004_v34 = vsel %vm7143_vm14, %v5983_v16, 0.0  ;;  %v4006_v33 = vsel %vm7144_vm12, %v6014_v9, 0.0  ;;  %v6368_v43 = vld [vmem:[#allocation2 + $0x109] sm:$0xff]  ;;  %v7148_v4 = vld [vmem:[#allocation40_spill] sm:$0xff] }
 0x14e   : > { %5008 = vmatmul.mubr.msk.bf16.vlgmr.msra.gmra.mrb[0].mxu1 %vm7140_vm5, %v3040_v20  ;;  %v6371_v45 = vpack.c.bf16 %v4004_v34, %v5997_v44  ;;  %v6374_v3 = vpack.c.bf16 %v4006_v33, %v6031_v0  ;;  %vm7147_vm5 = vnez %v7050_v8  ;;  %vm7149_vm7 = vnez %v7148_v4  ;;  %v7151_v34 = vld [vmem:[#allocation46_spill] sm:$0xff]  ;;  %v7156_v27 = vld [vmem:[#allocation43_spill] sm:$0xff]  ;;  %v7204_v35 = vld [vmem:[#allocation68_spill] sm:$0xff] }
 0x14f   : > { %7142 = vst [vmem:[#allocation84_spill] sm:$0xff] %v6358_v51  ;;  %5040 = vmatpush3.bf16.msra.mxu1 %v5759_v54  ;;  %5011 = vmatprep.mubr.msk.bf16.mxu1 %vm7139_vm3, %v3041_v31  ;;  %v4008_v20 = vsel %vm7147_vm5, %v6051_v46, 0.0  ;;  %v4010_v51 = vsel %vm7149_vm7, %v6084_v1, 0.0  ;;  %v7150_v54 = vld [vmem:[#allocation12_spill] sm:$0xff]  ;;  %v6386_v31 = vld [vmem:[%s6860_s6 + $0x70] sm:$0xff]   ;;  %v7153_v33 = vld [vmem:[#allocation54_spill] sm:$0xff]  ;;  %vm7157_vm3 = vnez %v7156_v27  ;;  %vm7163_vm1 = vnez %v7096_v59 }
 0x150   : > { %7145 = vst [vmem:[#allocation85_spill] sm:$0xff] %v6371_v45  ;;  %7146 = vst [vmem:[#allocation86_spill] sm:$0xff] %v6374_v3  ;;  %5041 = vmatprep.subr.bf16.mxu1 %v5422_v14  ;;  %4896 = vmatpush3.bf16.msra.mxu0 %v7150_v54  ;;  %v6389_v45 = vpack.c.bf16 %v4008_v20, %v7151_v34  ;;  %v6392_v3 = vpack.c.bf16 %v4010_v51, %v7153_v33  ;;  %v4012_v42 = vsel %vm7157_vm3, %v7155_v5, 0.0  ;;  %v6403_v54 = vld [vmem:[%s6860_s6 + $0x30] sm:$0xff]  }
 0x151   : > { %v4014_v12 = vsel %vm6071_vm15, %v6179_v63, 0.0  ;;  %4897 = vmatprep.subr.bf16.mxu0 %v5424_v36  ;;  %v6406_v20 = vpack.c.bf16 %v4012_v42, %v6111_v18  ;;  %v4018_v57 = vsel %vm7163_vm1, %v6355_v22, 0.0  ;;  %vm7166_vm11 = vnez %v7165_v28  ;;  %v7173_v28 = vld [vmem:[#allocation24_spill] sm:$0xff]  ;;  %v7280_v26 = vld [vmem:[#allocation75_spill] sm:$0xff] }
 0x152   : > { %7152 = vst [vmem:[#allocation40_spill] sm:$0xff] %v6389_v45  ;;  %7154 = vst [vmem:[#allocation12_spill] sm:$0xff] %v6392_v3  ;;  %v6409_v51 = vpack.c.bf16 %v4014_v12, %v6190_v47  ;;  %v7161_v3 = vld [vmem:[#allocation49_spill] sm:$0xff]  ;;  %v3016_v7 = vsel %vm7166_vm11, %v7164_v50, 0.0  ;;  %v6424_v42 = vpack.c.bf16 %v4018_v57, %v6368_v43  ;;  %v7169_v12 = vld [vmem:[#allocation16_spill] sm:$0xff]  ;;  %v3042_v13 = vpack.c.bf16 %v3014_v2, %v7171_v37 }
 0x153   : > { %7159 = vst [vmem:[#allocation46_spill] sm:$0xff] %v6406_v20  ;;  %vm7162_vm4 = vnez %v7161_v3  ;;  %5042 = vmatpush3.bf16.msra.mxu1 %v5422_v14  ;;  %v7170_v20 = vld [vmem:[#allocation33_spill] sm:$0xff]  ;;  %vm7172_vm1 = vcmask 261120   ;;  %v3043_v50 = vpack.c.bf16 %v3016_v7, %v7173_v28  ;;  %v7177_v57 = vld [vmem:[#allocation38_spill] sm:$0xff]  ;;  %v7180_v37 = vld [vmem:[#allocation48_spill] sm:$0xff]  ;;  %vm7181_vm15 = vnez %v7066_v11 }
 0x154   : > { %7160 = vst [vmem:[#allocation54_spill] sm:$0xff] %v6409_v51  ;;  %v4016_v45 = vsel %vm7162_vm4, %v6198_v58, 0.0  ;;  %7168 = vst [vmem:[#allocation43_spill] sm:$0xff] %v6424_v42  ;;  %v1417_v51 = vpack.c.bf16 %v7169_v12, %v1388_v30  ;;  %v1418_v29 = vpack.c.bf16 %v7170_v20, %v1390_v25  ;;  %4898 = vmatpush3.bf16.msra.mxu0 %v5424_v36  ;;  %5075 = vmatprep.subr.bf16.mxu1 %v6386_v31  ;;  %v7178_v30 = vld [vmem:[#allocation45_spill] sm:$0xff]  ;;  %v7183_v2 = vld [vmem:[#allocation23_spill] sm:$0xff] }
 0x155   : > { %v6421_v23 = vpack.c.bf16 %v4016_v45, %v6214_v32  ;;  %4931 = vmatprep.subr.bf16.mxu0 %v6403_v54  ;;  %vm7174_vm11 = vmmov %vm7172_vm1  ;;  %vm7179_vm13 = vnez %v7178_v30  ;;  %v1394_v25 = vsel %vm7181_vm15, %v7180_v37, 0.0  ;;  %v7182_v36 = vld [vmem:[#allocation25_spill] sm:$0xff]  ;;  %v7186_v45 = vld [vmem:[#allocation39_spill] sm:$0xff]  ;;  %v1404_v8 = vsel %vm6220_vm6, %v6211_v38, 0.0 }
 0x156   : > { %4868 = vmatmul.mubr.msk.bf16.gmra.mrb[36].mxu0 %vm7172_vm1, %v1417_v51  ;;  %vm7175_vm4 = vmmov %vm7172_vm1  ;;  %v1392_v14 = vsel %vm7179_vm13, %v7177_v57, 0.0  ;;  %v7185_v7 = vld [vmem:[#allocation29_spill] sm:$0xff]  ;;  %v1420_v51 = vpack.c.bf16 %v6140_v10, %v1394_v25  ;;  %v1425_v4 = vpack.c.bf16 %v6224_v48, %v1404_v8  ;;  %v3369_v15 = vsel %vm6235_vm8, %v6253_v62, 0.0 }
 0x157   : > { %7167 = vst [vmem:[#allocation55_spill] sm:$0xff] %v6421_v23  ;;  %4871 = vmatprep.mubr.msk.bf16.mxu0 %vm7174_vm11, %v1418_v29  ;;  %5012 = vmatmul.mubr.msk.bf16.gmra.mrb[4].mxu1 %vm7175_vm4, %v3042_v13  ;;  %vm7176_vm0 = vmmov %vm7172_vm1  ;;  %vm7184_vm1 = vnez %v7183_v2  ;;  %v3020_v29 = vsel %vm5877_vm10, %v7185_v7, 0.0  ;;  %v1419_v13 = vpack.c.bf16 %v7186_v45, %v1392_v14  ;;  %v7189_v23 = vld [vmem:[#allocation32_spill] sm:$0xff]  ;;  %v7195_v7 = vld [vmem:[#allocation59_spill] sm:$0xff] }
 0x158   : > { %5015 = vmatprep.mubr.msk.bf16.mxu1 %vm7176_vm0, %v3043_v50  ;;  %v3018_v28 = vsel %vm7184_vm1, %v7182_v36, 0.0  ;;  %v7187_v50 = vld [vmem:[#allocation27_spill] sm:$0xff]  ;;  %vm7188_vm4 = vmmov %vm7176_vm0  ;;  %v3045_v30 = vpack.c.bf16 %v3020_v29, %v7189_v23  ;;  %v7192_v36 = vld [vmem:[#allocation56_spill] sm:$0xff]  ;;  %v3024_v23 = vsel %vm7144_vm12, %v5983_v16, 0.0  ;;  %v1400_v16 = vsel %vm6207_vm2, %v7203_v17, 0.0 }
 0x159   : > { %v3044_v42 = vpack.c.bf16 %v3018_v28, %v7187_v50  ;;  %vm7190_vm11 = vmmov %vm7176_vm0  ;;  %v7193_v2 = vld [vmem:[#allocation52_spill] sm:$0xff]  ;;  %v7196_v14 = vld [vmem:[#allocation53_spill] sm:$0xff]  ;;  %v3022_v28 = vsel %vm7143_vm14, %v5949_v6, 0.0  ;;  %v3047_v50 = vpack.c.bf16 %v3024_v23, %v5997_v44  ;;  %v1402_v6 = vsel %vm6216_vm9, %v7204_v35, 0.0 }
 0x15a   : > { %vm7191_vm15 = vmmov %vm7176_vm0  ;;  %vm7194_vm1 = vnez %v7193_v2  ;;  %vm7197_vm10 = vnez %v7196_v14  ;;  %v7198_v29 = vld [vmem:[#allocation58_spill] sm:$0xff]  ;;  %v3028_v44 = vsel %vm7149_vm7, %v6051_v46, 0.0  ;;  %vm7210_vm7 = vnez %v7158_v52 }
 0x15b   : > { %v1396_v39 = vsel %vm7194_vm1, %v7192_v36, 0.0  ;;  %v1398_v25 = vsel %vm7197_vm10, %v7195_v7, 0.0  ;;  %vm7206_vm12 = vmmov %vm7176_vm0  ;;  %v3032_v46 = vsel %vm7210_vm7, %v7155_v5, 0.0  ;;  %v3363_v2 = vsel %vm6207_vm2, %v6211_v38, 0.0 }
 0x15c   : > { %vm7207_vm14 = vmmov %vm7176_vm0  ;;  %v3365_v14 = vsel %vm6216_vm9, %v6226_v53, 0.0 }
 0x15d   : > { %vm7219_vm7 = vmmov %vm7176_vm0 }
 0x15e   : > { %4872 = vmatmul.mubr.msk.bf16.gmra.mrb[40].mxu0 %vm7188_vm4, %v1419_v13  ;;  %v7199_v13 = vld [vmem:[#allocation64_spill] sm:$0xff]  ;;  %vm7201_vm4 = vmmov %vm7176_vm0 }
 0x15f   : > { %4875 = vmatprep.mubr.msk.bf16.mxu0 %vm7176_vm0, %v1420_v51  ;;  %5016 = vmatmul.mubr.msk.bf16.gmra.mrb[8].mxu1 %vm7190_vm11, %v3044_v42  ;;  %v1421_v42 = vpack.c.bf16 %v7198_v29, %v1396_v39  ;;  %v3046_v51 = vpack.c.bf16 %v3022_v28, %v5966_v56  ;;  %vm7202_vm11 = vmmov %vm7176_vm0  ;;  %v3026_v56 = vsel %vm7147_vm5, %v6014_v9, 0.0  ;;  %v7205_v39 = vld [vmem:[#allocation61_spill] sm:$0xff]  ;;  %v1424_v28 = vpack.c.bf16 %v6233_v21, %v1402_v6 }
 0x160   : > { %5019 = vmatprep.mubr.msk.bf16.mxu1 %vm7191_vm15, %v3045_v30  ;;  %v1422_v30 = vpack.c.bf16 %v7199_v13, %v1398_v25  ;;  %vm7200_vm15 = vmmov %vm7176_vm0  ;;  %v1423_v25 = vpack.c.bf16 %v7205_v39, %v1400_v16  ;;  %v3048_v23 = vpack.c.bf16 %v3026_v56, %v6031_v0  ;;  %v1406_v9 = vsel %vm6235_vm8, %v6226_v53, 0.0  ;;  %v7224_v56 = vld [vmem:[#allocation51_spill] sm:$0xff] }
 0x161   : > { %v3030_v0 = vsel %vm7157_vm3, %v6084_v1, 0.0  ;;  %vm7211_vm5 = vmmov %vm7176_vm0  ;;  %v7214_v1 = vld [vmem:[#allocation71_spill] sm:$0xff]  ;;  %vm7215_vm3 = vnez %v7120_v40  ;;  %v3389_v53 = vpack.c.bf16 %v6305_v41, %v3369_v15  ;;  %v3344_v40 = vld [vmem:[#allocation2 + $0x11f] sm:$0xff] }
 0x162   : > { %v1408_v5 = vsel %vm7215_vm3, %v7214_v1, 0.0  ;;  %v3367_v38 = vsel %vm6220_vm6, %v7214_v1, 0.0  ;;  %vm7275_vm2 = vmmov %vm7176_vm0  ;;  %v3371_v61 = vsel %vm7215_vm3, %v6255_v49, 0.0  ;;  %v7281_v1 = vld [vmem:[#allocation62_spill] sm:$0xff]  ;;  %v7318_v15 = vld [vmem:[#allocation76_spill] sm:$0xff] }
 0x163   : > { %v3388_v24 = vpack.c.bf16 %v6239_v19, %v3367_v38  ;;  %vm7277_vm9 = vmmov %vm7176_vm0 }
 0x164   : > { %vm7282_vm6 = vmmov %vm7176_vm0 }
 0x165   : > { %vm7285_vm8 = vmmov %vm7176_vm0 }
 0x166   : > { %4876 = vmatmul.mubr.msk.bf16.gmra.mrb[44].mxu0 %vm7200_vm15, %v1421_v42  ;;  %v3049_v42 = vpack.c.bf16 %v3028_v44, %v7151_v34  ;;  %vm7208_vm15 = vmmov %vm7176_vm0  ;;  %v1426_v34 = vpack.c.bf16 %v6267_v60, %v1406_v9 }
 0x167   : > { %4879 = vmatprep.mubr.msk.bf16.mxu0 %vm7201_vm4, %v1422_v30  ;;  %5020 = vmatmul.mubr.msk.bf16.gmra.mrb[12].mxu1 %vm7176_vm0, %v3046_v51  ;;  %vm7209_vm4 = vmmov %vm7176_vm0  ;;  %v3050_v30 = vpack.c.bf16 %v3030_v0, %v7153_v33  ;;  %v3051_v51 = vpack.c.bf16 %v3032_v46, %v6111_v18  ;;  %v1427_v33 = vpack.c.bf16 %v6239_v19, %v1408_v5  ;;  %v7232_v46 = vld [vmem:[#allocation8_spill] sm:$0xff]  ;;  %v7239_v5 = vld [vmem:[#allocation15_spill] sm:$0xff] }
 0x168   : > { %5023 = vmatprep.mubr.msk.bf16.mxu1 %vm7202_vm11, %v3047_v50  ;;  %vm7212_vm11 = vmmov %vm7176_vm0 }
 0x169   : > { %vm7288_vm3 = vmmov %vm7176_vm0 }
 0x16e   : > { %4880 = vmatmul.mubr.msk.bf16.gmra.mrb[48].mxu0 %vm7206_vm12, %v1423_v25  ;;  %vm7213_vm12 = vmmov %vm7176_vm0 }
 0x16f   : > { %4883 = vmatprep.mubr.msk.bf16.mxu0 %vm7207_vm14, %v1424_v28  ;;  %5024 = vmatmul.mubr.msk.bf16.gmra.mrb[16].mxu1 %vm7208_vm15, %v3048_v23  ;;  %vm7216_vm14 = vnez %v7125_v55  ;;  %vm7217_vm15 = vnez %v7161_v3  ;;  %v1930_v3 = vld [vmem:[#allocation2 + $0x11] sm:$0xff] }
 0x170   : > { %5027 = vmatprep.mubr.msk.bf16.mxu1 %vm7209_vm4, %v3049_v42  ;;  %v1410_v27 = vsel %vm7216_vm14, %v6253_v62, 0.0  ;;  %v3034_v52 = vsel %vm7217_vm15, %v6179_v63, 0.0  ;;  %vm7218_vm4 = vnez %v7096_v59  ;;  %v7222_v63 = vld [vmem:[#allocation77_spill] sm:$0xff]  ;;  %vm7225_vm15 = vnez %v7224_v56  ;;  %v7228_v28 = vld [vmem:[#allocation3_spill] sm:$0xff]  ;;  %v7230_v42 = vld [vmem:[#allocation74_spill] sm:$0xff] }
 0x171   : > { %v3036_v18 = vsel %vm7218_vm4, %v6198_v58, 0.0  ;;  %v1428_v50 = vpack.c.bf16 %v6305_v41, %v1410_v27  ;;  %v3052_v16 = vpack.c.bf16 %v3034_v52, %v6190_v47  ;;  %v1929_v58 = vld [vmem:[#allocation2 + $0x9] sm:$0xff]  ;;  %v2026_v44 = vsel %vm7225_vm15, %v1930_v3, 0.0  ;;  %v7226_v47 = vld [vmem:[#allocation69_spill] sm:$0xff]  ;;  %vm7234_vm15 = vmmov %vm7176_vm0 }
 0x172   : > { %v3053_v6 = vpack.c.bf16 %v3036_v18, %v6214_v32  ;;  %vm7227_vm4 = vnez %v7226_v47  ;;  %v5431_v32 = vld [vmem:[#allocation2 + $0x27] sm:$0xff]  ;;  %v2057_v9 = vpack.c.bf16 %v2026_v44, %v1929_v58  ;;  %v5426_v52 = vld [vmem:[%s6860_s6 + $0x78] sm:$0xff]   ;;  %v3373_v19 = vsel %vm7216_vm14, %v7280_v26, 0.0  ;;  %v3652_v55 = vld [vmem:[#allocation2 + $0x30] sm:$0xff] }
 0x173   : > { %v3038_v25 = vsel %vm7227_vm4, %v6355_v22, 0.0  ;;  %v7235_v22 = vld [vmem:[#allocation14_spill] sm:$0xff]  ;;  %v7241_v18 = vld [vmem:[#allocation9_spill] sm:$0xff]  ;;  %v7248_v3 = vld [vmem:[#allocation36_spill] sm:$0xff]  ;;  %v3390_v62 = vpack.c.bf16 %v7230_v42, %v3371_v61 }
 0x174   : > { %v3054_v0 = vpack.c.bf16 %v3038_v25, %v6368_v43  ;;  %v7252_v44 = vld [vmem:[#allocation21_spill] sm:$0xff]  ;;  %v7283_v41 = vld [vmem:[#allocation80_spill] sm:$0xff]  ;;  %vm7290_vm14 = vmmov %vm7176_vm0 }
 0x175   : > { %v3675_v61 = vld [vmem:[#allocation2 + $0xe8] sm:$0xff] }
 0x176   : > { %4884 = vmatmul.mubr.msk.bf16.gmra.mrb[52].mxu0 %vm7211_vm5, %v1425_v4  ;;  %vm7220_vm5 = vmmov %vm7176_vm0  ;;  %v7322_v26 = vld [vmem:[#allocation78_spill] sm:$0xff] }
 0x177   : > { %4887 = vmatprep.mubr.msk.bf16.mxu0 %vm7176_vm0, %v1426_v34  ;;  %5028 = vmatmul.mubr.msk.bf16.gmra.mrb[20].mxu1 %vm7212_vm11, %v3050_v30  ;;  %vm7221_vm11 = vmmov %vm7176_vm0  ;;  %v7236_v34 = vld [vmem:[#allocation5_spill] sm:$0xff] }
 0x178   : > { %5031 = vmatprep.mubr.msk.bf16.mxu1 %vm7213_vm12, %v3051_v51  ;;  %vm7223_vm12 = vnez %v7222_v63  ;;  %vm7237_vm4 = vnez %v7236_v34  ;;  %v7238_v51 = vld [vmem:[#allocation31_spill] sm:$0xff]  ;;  %v3655_v63 = vld [vmem:[#allocation2 + $0x48] sm:$0xff] }
 0x179   : > { %v1412_v59 = vsel %vm7223_vm12, %v6255_v49, 0.0  ;;  %v3347_v30 = vsel %vm7237_vm4, %v7235_v22, 0.0  ;;  %vm7245_vm4 = vmmov %vm7176_vm0  ;;  %v7289_v34 = vld [vmem:[#allocation7_spill] sm:$0xff] }
 0x17a   : > { %v1429_v8 = vpack.c.bf16 %v7230_v42, %v1412_v59  ;;  %v3378_v43 = vpack.c.bf16 %v7169_v12, %v3347_v30  ;;  %v7246_v12 = vld [vmem:[#allocation30_spill] sm:$0xff]  ;;  %v3654_v30 = vld [vmem:[#allocation2 + $0x40] sm:$0xff] }
 0x17b   : > { %v3651_v42 = vld [vmem:[#allocation2 + $0x28] sm:$0xff] }
 0x17c   : > { %v3683_v22 = vpack.c.bf16 %v3652_v55, %v3651_v42  ;;  %v7330_v55 = vld [vmem:[#allocation82_spill] sm:$0xff]  ;;  %v3682_v42 = vld [vmem:[#allocation2 + $0x120] sm:$0xff] }
 0x17e   : > { %4888 = vmatmul.mubr.msk.bf16.gmra.mrb[56].mxu0 %vm7219_vm7, %v1427_v33  ;;  %vm7229_vm7 = vnez %v7228_v28  ;;  %v7259_v28 = vld [vmem:[#allocation28_spill] sm:$0xff] }
 0x17f   : > { %4891 = vmatprep.mubr.msk.bf16.mxu0 %vm7220_vm5, %v1428_v50  ;;  %5032 = vmatmul.mubr.msk.bf16.gmra.mrb[24].mxu1 %vm7176_vm0, %v3052_v16  ;;  %v3345_v23 = vsel %vm7229_vm7, %v5431_v32, 0.0  ;;  %vm7231_vm5 = vmmov %vm7176_vm0  ;;  %vm7240_vm7 = vnez %v7239_v5  ;;  %v5428_v50 = vld [vmem:[%s6860_s6 + $0x38] sm:$0xff]   ;;  %v7243_v16 = vld [vmem:[#allocation13_spill] sm:$0xff] }
 0x180   : > { %5035 = vmatprep.mubr.msk.bf16.mxu1 %vm7221_vm11, %v3053_v6  ;;  %v3377_v4 = vpack.c.bf16 %v7232_v46, %v3345_v23  ;;  %vm7233_vm11 = vmmov %vm7176_vm0  ;;  %v3349_v27 = vsel %vm7240_vm7, %v7238_v51, 0.0  ;;  %vm7249_vm7 = vnez %v7248_v3  ;;  %v7257_v32 = vld [vmem:[#allocation26_spill] sm:$0xff]  ;;  %v7265_v23 = vld [vmem:[#allocation37_spill] sm:$0xff] }
 0x181   : > { %v3379_v33 = vpack.c.bf16 %v7170_v20, %v3349_v27  ;;  %v6578_v20 = vld [vmem:[%s6860_s6 + $0x80] sm:$0xff]   ;;  %v3353_v59 = vsel %vm7249_vm7, %v7180_v37, 0.0  ;;  %v3355_v37 = vsel %vm7179_vm13, %v7192_v36, 0.0  ;;  %vm7258_vm7 = vmmov %vm7176_vm0  ;;  %v3359_v36 = vsel %vm7194_vm1, %v7203_v17, 0.0  ;;  %v3656_v51 = vld [vmem:[#allocation2 + $0x50] sm:$0xff] }
 0x182   : > { %v3381_v58 = vpack.c.bf16 %v6140_v10, %v3353_v59  ;;  %v3382_v25 = vpack.c.bf16 %v7198_v29, %v3355_v37  ;;  %v7263_v29 = vld [vmem:[#allocation34_spill] sm:$0xff]  ;;  %vm7264_vm13 = vmmov %vm7176_vm0  ;;  %v3386_v17 = vpack.c.bf16 %v6224_v48, %v3363_v2  ;;  %v3653_v5 = vld [vmem:[#allocation2 + $0x38] sm:$0xff] }
 0x183   : > { %vm7269_vm1 = vmmov %vm7176_vm0  ;;  %v7274_v48 = vld [vmem:[#allocation50_spill] sm:$0xff]  ;;  %v3684_v27 = vpack.c.bf16 %v3654_v30, %v3653_v5  ;;  %v7299_v59 = vld [vmem:[#allocation35_spill] sm:$0xff] }
 0x184   : > { %v3659_v3 = vld [vmem:[#allocation2 + $0x68] sm:$0xff]  ;;  %v3670_v2 = vld [vmem:[#allocation2 + $0xc0] sm:$0xff] }
 0x185   : > { %v3663_v37 = vld [vmem:[#allocation2 + $0x88] sm:$0xff] }
 0x186   : > { %4892 = vmatmul.mubr.msk.bf16.gmra.mrb[60].mxu0 %vm7231_vm5, %v1429_v8  ;;  %vm7242_vm5 = vmmov %vm7176_vm0  ;;  %v3391_v8 = vpack.c.bf16 %v7283_v41, %v3373_v19  ;;  %v3680_v41 = vld [vmem:[#allocation2 + $0x110] sm:$0xff] }
 0x187   : > { %4899 = vmatprep.mubr.msk.bf16.mxu0 %vm7176_vm0, %v2057_v9  ;;  %5036 = vmatmul.mubr.msk.bf16.gmra.mrb[28].mxu1 %vm7233_vm11, %v3054_v0  ;;  %vm7247_vm11 = vnez %v7246_v12  ;;  %v7284_v9 = vld [vmem:[#allocation70_spill] sm:$0xff]  ;;  %v3343_v0 = vld [vmem:[#allocation2 + $0x117] sm:$0xff] }
 0x188   : > { %5043 = vmatprep.mubr.msk.bf16.mxu1 %vm7234_vm15, %v3377_v4  ;;  %vm7244_vm15 = vmmov %vm7176_vm0  ;;  %v3351_v6 = vsel %vm7247_vm11, %v7177_v57, 0.0  ;;  %vm7256_vm11 = vnez %v7066_v11  ;;  %v3361_v11 = vsel %vm7197_vm10, %v7204_v35, 0.0  ;;  %v7268_v35 = vld [vmem:[#allocation41_spill] sm:$0xff]  ;;  %v3375_v49 = vsel %vm7223_vm12, %v3343_v0, 0.0  ;;  %v7287_v4 = vld [vmem:[#allocation72_spill] sm:$0xff] }
 0x189   : > { %vm7271_vm10 = vmmov %vm7176_vm0  ;;  %v3392_v46 = vpack.c.bf16 %v3344_v40, %v3375_v49  ;;  %v3657_v12 = vld [vmem:[#allocation2 + $0x58] sm:$0xff]  ;;  %v3679_v0 = vld [vmem:[#allocation2 + $0x108] sm:$0xff] }
 0x18a   : > { %vm7294_vm12 = vmmov %vm7176_vm0  ;;  %v7328_v40 = vld [vmem:[#allocation81_spill] sm:$0xff]  ;;  %v3697_v49 = vpack.c.bf16 %v3680_v41, %v3679_v0  ;;  %v3957_v30 = vld [vmem:[#allocation2 + $0x29] sm:$0xff] }
 0x18e   : > { %4900 = vmatmul.mubr.msk.bf16.vlgmr.msra.gmra.mrb[32].mxu0 %vm7242_vm5, %v7241_v18  ;;  %vm7251_vm5 = vmmov %vm7176_vm0  ;;  %v3685_v18 = vpack.c.bf16 %v3656_v51, %v3655_v63  ;;  %v7334_v51 = vld [vmem:[#allocation83_spill] sm:$0xff] }
 0x18f   : > { %4903 = vmatprep.mubr.msk.bf16.mxu0 %vm7244_vm15, %v7243_v16  ;;  %5044 = vmatmul.mubr.msk.bf16.vlgmr.msra.gmra.mrb[0].mxu1 %vm7245_vm4, %v3378_v43  ;;  %vm7253_vm15 = vmmov %vm7176_vm0  ;;  %v5430_v43 = vld [vmem:[%s6860_s6 + $0x88] sm:$0xff]   ;;  %v3660_v16 = vld [vmem:[#allocation2 + $0x70] sm:$0xff] }
 0x190   : > { %5076 = vmatpush3.bf16.msra.mxu1 %v6386_v31  ;;  %5047 = vmatprep.mubr.msk.bf16.mxu1 %vm7176_vm0, %v3379_v33  ;;  %v3380_v31 = vpack.c.bf16 %v7186_v45, %v3351_v6  ;;  %vm7254_vm4 = vmmov %vm7176_vm0  ;;  %v3357_v45 = vsel %vm7256_vm11, %v7195_v7, 0.0  ;;  %v3384_v7 = vpack.c.bf16 %v7205_v39, %v3359_v36  ;;  %v7270_v39 = vld [vmem:[#allocation44_spill] sm:$0xff]  ;;  %v7295_v33 = vld [vmem:[#allocation19_spill] sm:$0xff] }
 0x191   : > { %5077 = vmatprep.subr.bf16.mxu1 %v5426_v52  ;;  %4932 = vmatpush3.bf16.msra.mxu0 %v6403_v54  ;;  %v7250_v54 = vld [vmem:[#allocation18_spill] sm:$0xff]  ;;  %v3383_v10 = vpack.c.bf16 %v7199_v13, %v3357_v45  ;;  %v3385_v13 = vpack.c.bf16 %v6233_v21, %v3361_v11  ;;  %vm7266_vm11 = vmmov %vm7176_vm0  ;;  %v3387_v21 = vpack.c.bf16 %v6267_v60, %v3365_v14  ;;  %v7276_v60 = vld [vmem:[#allocation57_spill] sm:$0xff] }
 0x192   : > { %4933 = vmatprep.subr.bf16.mxu0 %v5428_v50  ;;  %v7305_v45 = vld [vmem:[#allocation63_spill] sm:$0xff]  ;;  %v3665_v36 = vld [vmem:[#allocation2 + $0x98] sm:$0xff] }
 0x193   : > { %v3672_v14 = vld [vmem:[#allocation2 + $0xd0] sm:$0xff] }
 0x194   : > { %5078 = vmatpush3.bf16.msra.mxu1 %v5426_v52  ;;  %v7293_v52 = vld [vmem:[#allocation10_spill] sm:$0xff]  ;;  %v3962_v63 = vld [vmem:[#allocation2 + $0x51] sm:$0xff] }
 0x195   : > { %4934 = vmatpush3.bf16.msra.mxu0 %v5428_v50  ;;  %5111 = vmatprep.subr.bf16.mxu1 %v6578_v20  ;;  %v3658_v50 = vld [vmem:[#allocation2 + $0x60] sm:$0xff] }
 0x196   : > { %4904 = vmatmul.mubr.msk.bf16.gmra.mrb[36].mxu0 %vm7251_vm5, %v7250_v54  ;;  %vm7260_vm5 = vmmov %vm7176_vm0  ;;  %v3686_v6 = vpack.c.bf16 %v3658_v50, %v3657_v12  ;;  %v7301_v54 = vld [vmem:[#allocation42_spill] sm:$0xff] }
 0x197   : > { %4907 = vmatprep.mubr.msk.bf16.mxu0 %vm7253_vm15, %v7252_v44  ;;  %5048 = vmatmul.mubr.msk.bf16.gmra.mrb[4].mxu1 %vm7254_vm4, %v3380_v31  ;;  %vm7261_vm15 = vmmov %vm7176_vm0  ;;  %v3687_v31 = vpack.c.bf16 %v3660_v16, %v3659_v3  ;;  %v3661_v44 = vld [vmem:[#allocation2 + $0x78] sm:$0xff]  ;;  %v3961_v16 = vld [vmem:[#allocation2 + $0x49] sm:$0xff] }
 0x198   : > { %5051 = vmatprep.mubr.msk.bf16.mxu1 %vm7176_vm0, %v3381_v58  ;;  %vm7262_vm4 = vmmov %vm7176_vm0  ;;  %v3664_v58 = vld [vmem:[#allocation2 + $0x90] sm:$0xff] }
 0x199   : > { %v3966_v3 = vld [vmem:[#allocation2 + $0x71] sm:$0xff] }
 0x19e   : > { %4908 = vmatmul.mubr.msk.bf16.gmra.mrb[40].mxu0 %vm7258_vm7, %v7257_v32  ;;  %vm7267_vm7 = vmmov %vm7176_vm0  ;;  %v7307_v32 = vld [vmem:[#allocation65_spill] sm:$0xff] }
 0x19f   : > { %4911 = vmatprep.mubr.msk.bf16.mxu0 %vm7260_vm5, %v7259_v28  ;;  %5052 = vmatmul.mubr.msk.bf16.gmra.mrb[8].mxu1 %vm7261_vm15, %v3382_v25  ;;  %vm7272_vm5 = vmmov %vm7176_vm0  ;;  %v3689_v25 = vpack.c.bf16 %v3664_v58, %v3663_v37  ;;  %v3668_v28 = vld [vmem:[#allocation2 + $0xb0] sm:$0xff] }
 0x1a0   : > { %5055 = vmatprep.mubr.msk.bf16.mxu1 %vm7262_vm4, %v3383_v10  ;;  %vm7273_vm15 = vmmov %vm7176_vm0  ;;  %v3666_v10 = vld [vmem:[#allocation2 + $0xa0] sm:$0xff] }
 0x1a1   : > { %vm7278_vm4 = vmmov %vm7176_vm0  ;;  %v3690_v11 = vpack.c.bf16 %v3666_v10, %v3665_v36  ;;  %v7353_v36 = vld [vmem:[#allocation84_spill] sm:$0xff] }
 0x1a6   : > { %4912 = vmatmul.mubr.msk.bf16.gmra.mrb[44].mxu0 %vm7264_vm13, %v7263_v29  ;;  %vm7279_vm13 = vmmov %vm7176_vm0  ;;  %v7310_v29 = vld [vmem:[#allocation66_spill] sm:$0xff] }
 0x1a7   : > { %4915 = vmatprep.mubr.msk.bf16.mxu0 %vm7176_vm0, %v7265_v23  ;;  %5056 = vmatmul.mubr.msk.bf16.gmra.mrb[12].mxu1 %vm7266_vm11, %v3384_v7  ;;  %vm7286_vm11 = vmmov %vm7176_vm0  ;;  %v3667_v7 = vld [vmem:[#allocation2 + $0xa8] sm:$0xff]  ;;  %v7312_v23 = vld [vmem:[#allocation67_spill] sm:$0xff] }
 0x1a8   : > { %5059 = vmatprep.mubr.msk.bf16.mxu1 %vm7267_vm7, %v3385_v13  ;;  %vm7291_vm7 = vmmov %vm7176_vm0  ;;  %v3691_v13 = vpack.c.bf16 %v3668_v28, %v3667_v7  ;;  %v7356_v7 = vld [vmem:[#allocation86_spill] sm:$0xff] }
 0x1ae   : > { %4916 = vmatmul.mubr.msk.bf16.gmra.mrb[48].mxu0 %vm7269_vm1, %v7268_v35  ;;  %vm7292_vm1 = vmmov %vm7176_vm0 }
 0x1af   : > { %4919 = vmatprep.mubr.msk.bf16.mxu0 %vm7271_vm10, %v7270_v39  ;;  %5060 = vmatmul.mubr.msk.bf16.gmra.mrb[16].mxu1 %vm7272_vm5, %v3386_v17  ;;  %vm7296_vm10 = vmmov %vm7176_vm0  ;;  %v3669_v17 = vld [vmem:[#allocation2 + $0xb8] sm:$0xff]  ;;  %v7316_v39 = vld [vmem:[#allocation73_spill] sm:$0xff] }
 0x1b0   : > { %5063 = vmatprep.mubr.msk.bf16.mxu1 %vm7273_vm15, %v3387_v21  ;;  %vm7297_vm5 = vmmov %vm7176_vm0  ;;  %v3692_v35 = vpack.c.bf16 %v3670_v2, %v3669_v17  ;;  %v3671_v21 = vld [vmem:[#allocation2 + $0xc8] sm:$0xff]  ;;  %v7366_v17 = vld [vmem:[#allocation55_spill] sm:$0xff] }
 0x1b1   : > { %vm7298_vm15 = vmmov %vm7176_vm0  ;;  %v3693_v38 = vpack.c.bf16 %v3672_v14, %v3671_v21  ;;  %v7364_v2 = vld [vmem:[#allocation54_spill] sm:$0xff]  ;;  %v3987_v21 = vld [vmem:[#allocation2 + $0x119] sm:$0xff] }
 0x1b2   : > { %v3988_v14 = vld [vmem:[#allocation2 + $0x121] sm:$0xff] }
 0x1b6   : > { %4920 = vmatmul.mubr.msk.bf16.gmra.mrb[52].mxu0 %vm7275_vm2, %v7274_v48  ;;  %vm7300_vm2 = vmmov %vm7176_vm0  ;;  %v3676_v48 = vld [vmem:[#allocation2 + $0xf0] sm:$0xff] }
 0x1b7   : > { %4923 = vmatprep.mubr.msk.bf16.mxu0 %vm7277_vm9, %v7276_v60  ;;  %5064 = vmatmul.mubr.msk.bf16.gmra.mrb[20].mxu1 %vm7278_vm4, %v3388_v24  ;;  %vm7302_vm9 = vmmov %vm7176_vm0  ;;  %v3674_v24 = vld [vmem:[#allocation2 + $0xe0] sm:$0xff]  ;;  %v3695_v19 = vpack.c.bf16 %v3676_v48, %v3675_v61 }
 0x1b8   : > { %5067 = vmatprep.mubr.msk.bf16.mxu1 %vm7279_vm13, %v3389_v53  ;;  %vm7303_vm4 = vmmov %vm7176_vm0  ;;  %v3673_v53 = vld [vmem:[#allocation2 + $0xd8] sm:$0xff] }
 0x1b9   : > { %vm7304_vm13 = vmmov %vm7176_vm0  ;;  %v3694_v60 = vpack.c.bf16 %v3674_v24, %v3673_v53 }
 0x1be   : > { %4924 = vmatmul.mubr.msk.bf16.gmra.mrb[56].mxu0 %vm7282_vm6, %v7281_v1  ;;  %vm7306_vm6 = vmmov %vm7176_vm0  ;;  %v3678_v1 = vld [vmem:[#allocation2 + $0x100] sm:$0xff] }
 0x1bf   : > { %4927 = vmatprep.mubr.msk.bf16.mxu0 %vm7285_vm8, %v7284_v9  ;;  %5068 = vmatmul.mubr.msk.bf16.gmra.mrb[24].mxu1 %vm7176_vm0, %v3390_v62  ;;  %vm7308_vm8 = vmmov %vm7176_vm0  ;;  %v7324_v62 = vld [vmem:[#allocation79_spill] sm:$0xff] }
 0x1c0   : > { %5071 = vmatprep.mubr.msk.bf16.mxu1 %vm7286_vm11, %v3391_v8  ;;  %vm7309_vm11 = vmmov %vm7176_vm0  ;;  %v3677_v8 = vld [vmem:[#allocation2 + $0xf8] sm:$0xff] }
 0x1c1   : > { %v3696_v9 = vpack.c.bf16 %v3678_v1, %v3677_v8 }
 0x1c6   : > { %4928 = vmatmul.mubr.msk.bf16.gmra.mrb[60].mxu0 %vm7288_vm3, %v7287_v4  ;;  %vm7311_vm3 = vmmov %vm7176_vm0  ;;  %v3958_v4 = vld [vmem:[#allocation2 + $0x31] sm:$0xff] }
 0x1c7   : > { %4935 = vmatprep.mubr.msk.bf16.mxu0 %vm7290_vm14, %v7289_v34  ;;  %5072 = vmatmul.mubr.msk.bf16.gmra.mrb[28].mxu1 %vm7291_vm7, %v3392_v46  ;;  %vm7313_vm14 = vmmov %vm7176_vm0  ;;  %v3681_v46 = vld [vmem:[#allocation2 + $0x118] sm:$0xff] }
 0x1c8   : > { %5079 = vmatprep.mubr.msk.bf16.mxu1 %vm7292_vm1, %v3683_v22  ;;  %vm7314_vm7 = vmmov %vm7176_vm0  ;;  %v3698_v22 = vpack.c.bf16 %v3682_v42, %v3681_v46 }
 0x1c9   : > { %vm7315_vm1 = vmmov %vm7176_vm0 }
 0x1ce   : > { %4936 = vmatmul.mubr.msk.bf16.vlgmr.msra.gmra.mrb[32].mxu0 %vm7294_vm12, %v7293_v52  ;;  %vm7317_vm12 = vmmov %vm7176_vm0  ;;  %v7338_v52 = vld [vmem:[#allocation4_spill] sm:$0xff] }
 0x1cf   : > { %4939 = vmatprep.mubr.msk.bf16.mxu0 %vm7296_vm10, %v7295_v33  ;;  %5080 = vmatmul.mubr.msk.bf16.vlgmr.msra.gmra.mrb[0].mxu1 %vm7297_vm5, %v3684_v27  ;;  %vm7319_vm10 = vmmov %vm7176_vm0  ;;  %v3960_v27 = vld [vmem:[#allocation2 + $0x41] sm:$0xff] }
 0x1d0   : > { %5112 = vmatpush3.bf16.msra.mxu1 %v6578_v20  ;;  %5083 = vmatprep.mubr.msk.bf16.mxu1 %vm7298_vm15, %v3685_v18  ;;  %v3662_v20 = vld [vmem:[#allocation2 + $0x80] sm:$0xff]  ;;  %vm7320_vm5 = vmmov %vm7176_vm0  ;;  %v7340_v33 = vld [vmem:[#allocation6_spill] sm:$0xff] }
 0x1d1   : > { %5113 = vmatprep.subr.bf16.mxu1 %v5430_v43  ;;  %v3688_v57 = vpack.c.bf16 %v3662_v20, %v3661_v44  ;;  %vm7321_vm15 = vmmov %vm7176_vm0  ;;  %v7346_v20 = vld [vmem:[#allocation17_spill] sm:$0xff] }
 0x1d4   : > { %5114 = vmatpush3.bf16.msra.mxu1 %v5430_v43  ;;  %v3959_v43 = vld [vmem:[#allocation2 + $0x39] sm:$0xff] }
 0x1d6   : > { %4940 = vmatmul.mubr.msk.bf16.gmra.mrb[36].mxu0 %vm7300_vm2, %v7299_v59  ;;  %vm7323_vm2 = vmmov %vm7176_vm0  ;;  %v3963_v59 = vld [vmem:[#allocation2 + $0x59] sm:$0xff] }
 0x1d7   : > { %4943 = vmatprep.mubr.msk.bf16.mxu0 %vm7302_vm9, %v7301_v54  ;;  %5084 = vmatmul.mubr.msk.bf16.gmra.mrb[4].mxu1 %vm7303_vm4, %v3686_v6  ;;  %vm7325_vm9 = vmmov %vm7176_vm0  ;;  %v3964_v6 = vld [vmem:[#allocation2 + $0x61] sm:$0xff] }
 0x1d8   : > { %5087 = vmatprep.mubr.msk.bf16.mxu1 %vm7304_vm13, %v3687_v31  ;;  %vm7326_vm4 = vmmov %vm7176_vm0  ;;  %v7344_v31 = vld [vmem:[#allocation11_spill] sm:$0xff] }
 0x1d9   : > { %vm7327_vm13 = vmmov %vm7176_vm0 }
 0x1de   : > { %4944 = vmatmul.mubr.msk.bf16.gmra.mrb[40].mxu0 %vm7306_vm6, %v7305_v45  ;;  %vm7329_vm6 = vmmov %vm7176_vm0  ;;  %v3968_v45 = vld [vmem:[#allocation2 + $0x81] sm:$0xff] }
 0x1df   : > { %4947 = vmatprep.mubr.msk.bf16.mxu0 %vm7308_vm8, %v7307_v32  ;;  %5088 = vmatmul.mubr.msk.bf16.gmra.mrb[8].mxu1 %vm7176_vm0, %v3688_v57  ;;  %vm7331_vm8 = vmmov %vm7176_vm0  ;;  %v3965_v57 = vld [vmem:[#allocation2 + $0x69] sm:$0xff] }
 0x1e0   : > { %5091 = vmatprep.mubr.msk.bf16.mxu1 %vm7309_vm11, %v3689_v25  ;;  %vm7332_vm11 = vmmov %vm7176_vm0  ;;  %v3967_v25 = vld [vmem:[#allocation2 + $0x79] sm:$0xff]  ;;  %v7350_v32 = vld [vmem:[#allocation23_spill] sm:$0xff] }
 0x1e6   : > { %4948 = vmatmul.mubr.msk.bf16.gmra.mrb[44].mxu0 %vm7311_vm3, %v7310_v29  ;;  %vm7333_vm3 = vnez %v7224_v56  ;;  %v7358_v29 = vld [vmem:[#allocation40_spill] sm:$0xff] }
 0x1e7   : > { %4951 = vmatprep.mubr.msk.bf16.mxu0 %vm7313_vm14, %v7312_v23  ;;  %5092 = vmatmul.mubr.msk.bf16.gmra.mrb[12].mxu1 %vm7314_vm7, %v3690_v11  ;;  %v3990_v34 = vsel %vm7333_vm3, %v3958_v4, 0.0  ;;  %vm7335_vm14 = vmmov %vm7176_vm0  ;;  %v7354_v11 = vld [vmem:[#allocation85_spill] sm:$0xff]  ;;  %v7362_v23 = vld [vmem:[#allocation46_spill] sm:$0xff] }
 0x1e8   : > { %5095 = vmatprep.mubr.msk.bf16.mxu1 %vm7315_vm1, %v3691_v13  ;;  %v4021_v5 = vpack.c.bf16 %v3990_v34, %v3957_v30  ;;  %vm7336_vm7 = vmmov %vm7176_vm0  ;;  %v7360_v13 = vld [vmem:[#allocation12_spill] sm:$0xff] }
 0x1e9   : > { %vm7337_vm1 = vmmov %vm7176_vm0 }
 0x1ea   : > { %vm7357_vm3 = vmmov %vm7176_vm0 }
 0x1ee   : > { %4952 = vmatmul.mubr.msk.bf16.gmra.mrb[48].mxu0 %vm7317_vm12, %v7316_v39  ;;  %vm7339_vm12 = vnez %v7338_v52 }
 0x1ef   : > { %4955 = vmatprep.mubr.msk.bf16.mxu0 %vm7319_vm10, %v7318_v15  ;;  %5096 = vmatmul.mubr.msk.bf16.gmra.mrb[16].mxu1 %vm7320_vm5, %v3692_v35  ;;  %v3992_v18 = vsel %vm7339_vm12, %v3960_v27, 0.0  ;;  %vm7341_vm10 = vnez %v7340_v33  ;;  %vm7342_vm5 = vmmov %vm7176_vm0  ;;  %v7368_v35 = vld [vmem:[#allocation43_spill] sm:$0xff] }
 0x1f0   : > { %5099 = vmatprep.mubr.msk.bf16.mxu1 %vm7321_vm15, %v3693_v38  ;;  %v3994_v50 = vsel %vm7341_vm10, %v3962_v63, 0.0  ;;  %v4022_v56 = vpack.c.bf16 %v3992_v18, %v3959_v43  ;;  %vm7343_vm15 = vmmov %vm7176_vm0 }
 0x1f1   : > { %v4023_v12 = vpack.c.bf16 %v3994_v50, %v3961_v16  ;;  %vm7365_vm12 = vmmov %vm7176_vm0 }
 0x1f2   : > { %vm7367_vm10 = vmmov %vm7176_vm0 }
 0x1f6   : > { %4956 = vmatmul.mubr.msk.bf16.gmra.mrb[52].mxu0 %vm7323_vm2, %v7322_v26  ;;  %vm7345_vm2 = vnez %v7344_v31 }
 0x1f7   : > { %4959 = vmatprep.mubr.msk.bf16.mxu0 %vm7325_vm9, %v7324_v62  ;;  %5100 = vmatmul.mubr.msk.bf16.gmra.mrb[20].mxu1 %vm7326_vm4, %v3694_v60  ;;  %v3996_v54 = vsel %vm7345_vm2, %v3964_v6, 0.0  ;;  %vm7347_vm9 = vnez %v7346_v20  ;;  %vm7348_vm4 = vmmov %vm7176_vm0 }
 0x1f8   : > { %5103 = vmatprep.mubr.msk.bf16.mxu1 %vm7327_vm13, %v3695_v19  ;;  %v3998_v58 = vsel %vm7347_vm9, %v3966_v3, 0.0  ;;  %v4024_v44 = vpack.c.bf16 %v3996_v54, %v3963_v59  ;;  %vm7349_vm13 = vmmov %vm7176_vm0 }
 0x1f9   : > { %v4025_v37 = vpack.c.bf16 %v3998_v58, %v3965_v57  ;;  %vm7371_vm2 = vmmov %vm7176_vm0 }
 0x1fe   : > { %4960 = vmatmul.mubr.msk.bf16.gmra.mrb[56].mxu0 %vm7329_vm6, %v7328_v40  ;;  %vm7351_vm6 = vnez %v7350_v32 }
 0x1ff   : > { %4963 = vmatprep.mubr.msk.bf16.mxu0 %vm7331_vm8, %v7330_v55  ;;  %5104 = vmatmul.mubr.msk.bf16.gmra.mrb[24].mxu1 %vm7176_vm0, %v3696_v9  ;;  %v4000_v10 = vsel %vm7351_vm6, %v3968_v45, 0.0  ;;  %vm7352_vm8 = vmmov %vm7176_vm0 }
 0x200   : > { %5107 = vmatprep.mubr.msk.bf16.mxu1 %vm7332_vm11, %v3697_v49  ;;  %v4026_v28 = vpack.c.bf16 %v4000_v10, %v3967_v25  ;;  %vm7355_vm11 = vmmov %vm7176_vm0 }
 0x206   : > { %4964 = vmatmul.mubr.msk.bf16.gmra.mrb[60].mxu0 %vm7335_vm14, %v7334_v51  ;;  %vm7359_vm14 = vmmov %vm7176_vm0 }
 0x207   : > { %5108 = vmatmul.mubr.msk.bf16.gmra.mrb[28].mxu1 %vm7336_vm7, %v3698_v22  ;;  %vm7361_vm7 = vmmov %vm7176_vm0 }
 0x208   : > { %5115 = vmatprep.mubr.msk.bf16.mxu1 %vm7337_vm1, %v4021_v5  ;;  %vm7363_vm1 = vmmov %vm7176_vm0 }
 0x20f   : > { %5116 = vmatmul.mubr.msk.bf16.vlgmr.msra.gmra.mrb[0].mxu1 %vm7342_vm5, %v4022_v56  ;;  %vm7369_vm5 = vmmov %vm7176_vm0 }
 0x210   : > { %5119 = vmatprep.mubr.msk.bf16.mxu1 %vm7343_vm15, %v4023_v12  ;;  %vm7370_vm15 = vnez %v7226_v47 }
 0x211   : > { %v4020_v39 = vsel %vm7370_vm15, %v3988_v14, 0.0 }
 0x212   : > { %v4036_v38 = vpack.c.bf16 %v4020_v39, %v3987_v21 }
 0x217   : > { %5120 = vmatmul.mubr.msk.bf16.gmra.mrb[4].mxu1 %vm7348_vm4, %v4024_v44 }
 0x218   : > { %5123 = vmatprep.mubr.msk.bf16.mxu1 %vm7349_vm13, %v4025_v37 }
 0x21f   : > { %5124 = vmatmul.mubr.msk.bf16.gmra.mrb[8].mxu1 %vm7352_vm8, %v4026_v28 }
 0x220   : > { %5127 = vmatprep.mubr.msk.bf16.mxu1 %vm7176_vm0, %v7353_v36 }
 0x227   : > { %5128 = vmatmul.mubr.msk.bf16.gmra.mrb[12].mxu1 %vm7355_vm11, %v7354_v11 }
 0x228   : > { %5131 = vmatprep.mubr.msk.bf16.mxu1 %vm7357_vm3, %v7356_v7 }
 0x22f   : > { %5132 = vmatmul.mubr.msk.bf16.gmra.mrb[16].mxu1 %vm7359_vm14, %v7358_v29 }
 0x230   : > { %5135 = vmatprep.mubr.msk.bf16.mxu1 %vm7361_vm7, %v7360_v13 }
 0x237   : > { %5136 = vmatmul.mubr.msk.bf16.gmra.mrb[20].mxu1 %vm7363_vm1, %v7362_v23 }
 0x238   : > { %5139 = vmatprep.mubr.msk.bf16.mxu1 %vm7365_vm12, %v7364_v2 }
 0x23f   : > { %5140 = vmatmul.mubr.msk.bf16.gmra.mrb[24].mxu1 %vm7367_vm10, %v7366_v17 }
 0x240   : > { %5143 = vmatprep.mubr.msk.bf16.mxu1 %vm7369_vm5, %v7368_v35 }
 0x247   : > { %5144 = vmatmul.mubr.msk.bf16.gmra.mrb[28].mxu1 %vm7371_vm2, %v4036_v38 }
 0x2a1   : > { %v4937_v15 = vpop.f32.mrb[32].mxu0 }
 0x2a2   : > { %v2510_v24 = vpop.f32.mrb[33].mxu0 }
 0x2a3   : > { %v4938_v48 = vpop.f32.mrb[34].mxu0 }
 0x2a4   : > { %v2513_v53 = vpop.f32.mrb[35].mxu0 }
 0x2a9   : > { %v4941_v60 = vpop.f32.mrb[36].mxu0 }
 0x2aa   : > { %v2526_v61 = vpop.f32.mrb[37].mxu0 }
 0x2ab   : > { %v4942_v26 = vpop.f32.mrb[38].mxu0 }
 0x2ac   : > { %v2529_v19 = vpop.f32.mrb[39].mxu0 }
 0x2b1   : > { %v4945_v62 = vpop.f32.mrb[40].mxu0 }
 0x2b2   : > { %v2542_v1 = vpop.f32.mrb[41].mxu0 }
 0x2b3   : > { %v4946_v41 = vpop.f32.mrb[42].mxu0 }
 0x2b4   : > { %v2545_v8 = vpop.f32.mrb[43].mxu0 }
 0x2b9   : > { %v4949_v9 = vpop.f32.mrb[44].mxu0 }
 0x2ba   : > { %v2558_v0 = vpop.f32.mrb[45].mxu0 }
 0x2bb   : > { %v4950_v40 = vpop.f32.mrb[46].mxu0 }
 0x2bc   : > { %v6761_v47 = vpop.f32.mrb[47].mxu0 }
 0x2c1   : > { %v6763_v49 = vpop.f32.mrb[48].mxu0 }
 0x2c2   : > { %v6765_v55 = vpop.f32.mrb[49].mxu0 }
 0x2c3   : > { %v6767_v46 = vpop.f32.mrb[50].mxu0 }
 0x2c4   : > { %v6769_v42 = vpop.f32.mrb[51].mxu0 }
 0x2c9   : > { %v6771_v4 = vpop.f32.mrb[52].mxu0 }
 0x2ca   : > { %v6773_v22 = vpop.f32.mrb[53].mxu0 }
 0x2cb   : > { %v6775_v34 = vpop.f32.mrb[54].mxu0 }
 0x2cc   : > { %v6777_v30 = vpop.f32.mrb[55].mxu0 }
 0x2d1   : > { %v6779_v51 = vpop.f32.mrb[56].mxu0 }
 0x2d2   : > { %v6781_v5 = vpop.f32.mrb[57].mxu0 }
 0x2d3   : > { %v6783_v27 = vpop.f32.mrb[58].mxu0 }
 0x2d4   : > { %v6785_v63 = vpop.f32.mrb[59].mxu0 }
 0x2d9   : > { %v6787_v43 = vpop.f32.mrb[60].mxu0 }
 0x2da   : > { %v6789_v52 = vpop.f32.mrb[61].mxu0 }
 0x2db   : > { %v6791_v18 = vpop.f32.mrb[62].mxu0 }
 0x2dc   : > { %v6793_v33 = vpop.f32.mrb[63].mxu0 }
 0x2e2   : > { %v5117_v50 = vpop.f32.mrb[0].mxu1 }
 0x2e3   : > { %v5147_v56 = vadd.f32 %v5117_v50, %v4937_v15  ;;  %v4136_v16 = vpop.f32.mrb[1].mxu1 }
 0x2e4   : > { %v5148_v12 = vadd.f32 %v4136_v16, %v2510_v24  ;;  %v5118_v6 = vpop.f32.mrb[2].mxu1 }
 0x2e5   : > { %4297 = vst [vmem:[%s6800_s15 + $0x10] sm:$0xff] %v5147_v56  ;;  %v5149_v3 = vadd.f32 %v5118_v6, %v4938_v48  ;;  %v4139_v59 = vpop.f32.mrb[3].mxu1 }
 0x2e6   : > { %4295 = vst [vmem:[%s6800_s15] sm:$0xff] %v5148_v12  ;;  %v5150_v31 = vadd.f32 %v4139_v59, %v2513_v53 }
 0x2e7   : > { %4298 = vst [vmem:[%s6800_s15 + $0x18] sm:$0xff] %v5149_v3 }
 0x2e8   : > { %4296 = vst [vmem:[%s6800_s15 + $0x8] sm:$0xff] %v5150_v31 }
 0x2ea   : > { %v5121_v54 = vpop.f32.mrb[4].mxu1 }
 0x2eb   : > { %v5151_v20 = vadd.f32 %v5121_v54, %v4941_v60  ;;  %v4152_v58 = vpop.f32.mrb[5].mxu1 }
 0x2ec   : > { %v5152_v44 = vadd.f32 %v4152_v58, %v2526_v61  ;;  %v5122_v57 = vpop.f32.mrb[6].mxu1 }
 0x2ed   : > { %4301 = vst [vmem:[%s6800_s15 + $0x30] sm:$0xff] %v5151_v20  ;;  %v5153_v37 = vadd.f32 %v5122_v57, %v4942_v26  ;;  %v4155_v45 = vpop.f32.mrb[7].mxu1 }
 0x2ee   : > { %4299 = vst [vmem:[%s6800_s15 + $0x20] sm:$0xff] %v5152_v44  ;;  %v5154_v25 = vadd.f32 %v4155_v45, %v2529_v19 }
 0x2ef   : > { %4302 = vst [vmem:[%s6800_s15 + $0x38] sm:$0xff] %v5153_v37 }
 0x2f0   : > { %4300 = vst [vmem:[%s6800_s15 + $0x28] sm:$0xff] %v5154_v25 }
 0x2f2   : > { %v5125_v32 = vpop.f32.mrb[8].mxu1 }
 0x2f3   : > { %v5155_v10 = vadd.f32 %v5125_v32, %v4945_v62  ;;  %v4168_v28 = vpop.f32.mrb[9].mxu1 }
 0x2f4   : > { %v5156_v36 = vadd.f32 %v4168_v28, %v2542_v1  ;;  %v5126_v11 = vpop.f32.mrb[10].mxu1 }
 0x2f5   : > { %4305 = vst [vmem:[%s6800_s15 + $0x50] sm:$0xff] %v5155_v10  ;;  %v5157_v7 = vadd.f32 %v5126_v11, %v4946_v41  ;;  %v4171_v29 = vpop.f32.mrb[11].mxu1 }
 0x2f6   : > { %4303 = vst [vmem:[%s6800_s15 + $0x40] sm:$0xff] %v5156_v36  ;;  %v5158_v13 = vadd.f32 %v4171_v29, %v2545_v8 }
 0x2f7   : > { %4306 = vst [vmem:[%s6800_s15 + $0x58] sm:$0xff] %v5157_v7 }
 0x2f8   : > { %4304 = vst [vmem:[%s6800_s15 + $0x48] sm:$0xff] %v5158_v13 }
 0x2fa   : > { %v5129_v23 = vpop.f32.mrb[12].mxu1 }
 0x2fb   : > { %v5159_v2 = vadd.f32 %v5129_v23, %v4949_v9  ;;  %v4184_v14 = vpop.f32.mrb[13].mxu1 }
 0x2fc   : > { %v5160_v17 = vadd.f32 %v4184_v14, %v2558_v0  ;;  %v5130_v35 = vpop.f32.mrb[14].mxu1 }
 0x2fd   : > { %4309 = vst [vmem:[%s6800_s15 + $0x70] sm:$0xff] %v5159_v2  ;;  %v5161_v21 = vadd.f32 %v5130_v35, %v4950_v40  ;;  %v4187_v39 = vpop.f32.mrb[15].mxu1 }
 0x2fe   : > { %4307 = vst [vmem:[%s6800_s15 + $0x60] sm:$0xff] %v5160_v17  ;;  %v5162_v38 = vadd.f32 %v4187_v39, %v6761_v47 }
 0x2ff   : > { %4310 = vst [vmem:[%s6800_s15 + $0x78] sm:$0xff] %v5161_v21 }
 0x300   : > { %4308 = vst [vmem:[%s6800_s15 + $0x68] sm:$0xff] %v5162_v38 }
 0x302   : > { %v5133_v15 = vpop.f32.mrb[16].mxu1 }
 0x303   : > { %v5163_v24 = vadd.f32 %v5133_v15, %v6763_v49  ;;  %v4200_v48 = vpop.f32.mrb[17].mxu1 }
 0x304   : > { %v5164_v53 = vadd.f32 %v4200_v48, %v6765_v55  ;;  %v5134_v60 = vpop.f32.mrb[18].mxu1 }
 0x305   : > { %4313 = vst [vmem:[%s6800_s15 + $0x90] sm:$0xff] %v5163_v24  ;;  %v5165_v61 = vadd.f32 %v5134_v60, %v6767_v46  ;;  %v4203_v26 = vpop.f32.mrb[19].mxu1 }
 0x306   : > { %4311 = vst [vmem:[%s6800_s15 + $0x80] sm:$0xff] %v5164_v53  ;;  %v5166_v19 = vadd.f32 %v4203_v26, %v6769_v42 }
 0x307   : > { %4314 = vst [vmem:[%s6800_s15 + $0x98] sm:$0xff] %v5165_v61 }
 0x308   : > { %4312 = vst [vmem:[%s6800_s15 + $0x88] sm:$0xff] %v5166_v19 }
 0x30a   : > { %v5137_v62 = vpop.f32.mrb[20].mxu1 }
 0x30b   : > { %v5167_v1 = vadd.f32 %v5137_v62, %v6771_v4  ;;  %v4216_v41 = vpop.f32.mrb[21].mxu1 }
 0x30c   : > { %v5168_v8 = vadd.f32 %v4216_v41, %v6773_v22  ;;  %v5138_v9 = vpop.f32.mrb[22].mxu1 }
 0x30d   : > { %4317 = vst [vmem:[%s6800_s15 + $0xb0] sm:$0xff] %v5167_v1  ;;  %v5169_v0 = vadd.f32 %v5138_v9, %v6775_v34  ;;  %v4219_v40 = vpop.f32.mrb[23].mxu1 }
 0x30e   : > { %4315 = vst [vmem:[%s6800_s15 + $0xa0] sm:$0xff] %v5168_v8  ;;  %v5170_v47 = vadd.f32 %v4219_v40, %v6777_v30 }
 0x30f   : > { %4318 = vst [vmem:[%s6800_s15 + $0xb8] sm:$0xff] %v5169_v0 }
 0x310   : > { %4316 = vst [vmem:[%s6800_s15 + $0xa8] sm:$0xff] %v5170_v47 }
 0x312   : > { %v5141_v49 = vpop.f32.mrb[24].mxu1 }
 0x313   : > { %v5171_v55 = vadd.f32 %v5141_v49, %v6779_v51  ;;  %v4232_v46 = vpop.f32.mrb[25].mxu1 }
 0x314   : > { %v5172_v42 = vadd.f32 %v4232_v46, %v6781_v5  ;;  %v5142_v4 = vpop.f32.mrb[26].mxu1 }
 0x315   : > { %4321 = vst [vmem:[%s6800_s15 + $0xd0] sm:$0xff] %v5171_v55  ;;  %v5173_v22 = vadd.f32 %v5142_v4, %v6783_v27  ;;  %v4235_v34 = vpop.f32.mrb[27].mxu1 }
 0x316   : > { %4319 = vst [vmem:[%s6800_s15 + $0xc0] sm:$0xff] %v5172_v42  ;;  %v5174_v30 = vadd.f32 %v4235_v34, %v6785_v63 }
 0x317   : > { %4322 = vst [vmem:[%s6800_s15 + $0xd8] sm:$0xff] %v5173_v22 }
 0x318   : > { %4320 = vst [vmem:[%s6800_s15 + $0xc8] sm:$0xff] %v5174_v30 }
 0x31a   : > { %v5145_v50 = vpop.f32.mrb[28].mxu1 }
 0x31b   : > { %v5175_v51 = vadd.f32 %v5145_v50, %v6787_v43  ;;  %v4248_v56 = vpop.f32.mrb[29].mxu1 }
 0x31c   : > { %v5176_v16 = vadd.f32 %v4248_v56, %v6789_v52  ;;  %v5146_v5 = vpop.f32.mrb[30].mxu1 }
 0x31d   : > { %4325 = vst [vmem:[%s6800_s15 + $0xf0] sm:$0xff] %v5175_v51  ;;  %v5177_v12 = vadd.f32 %v5146_v5, %v6791_v18  ;;  %v4251_v6 = vpop.f32.mrb[31].mxu1 }
 0x31e   : > { %4323 = vst [vmem:[%s6800_s15 + $0xe0] sm:$0xff] %v5176_v16  ;;  %v5178_v27 = vadd.f32 %v4251_v6, %v6793_v33 }
 0x31f   : > { %4326 = vst [vmem:[%s6800_s15 + $0xf8] sm:$0xff] %v5177_v12 }
 0x320   : > { %4324 = vst [vmem:[%s6800_s15 + $0xe8] sm:$0xff] %v5178_v27 }
 0x321 PF: > { %s17_s24 = sadd.s32 1, %s5438_s24  }
 0x322   : > { %p14_p4 = scmp.ge.s32.totalorder %s17_s24, 4  }
 0x324   :  { %16 = sbr.rel (!%p14_p4) target bundleno = 1 (0x1), region = 86 }

</bundles_post_ra>
